<compile_context>
chip_gen: v6e
topology: v6e:2x2x1
jax: 0.10.0
libtpu: 0.0.40
codegen_flags: <defaults>
</compile_context>

<pallas_src>
import functools

import jax
import jax.numpy as jnp
from jax.experimental import pallas as pl
from jax.experimental.pallas import tpu as pltpu


# -----------------------------------------------------------------------------------
# Single fused kernel (one batch element per grid step):
# patch-embed -> encoder layer -> mean-pool -> classifier.
# -----------------------------------------------------------------------------------
def vit_fused_kernel(patches_ref, w_pe_ref, b_pe_ref, bn_scale_ref, bn_shift_ref,
                     w_qkv_ref, b_qkv_ref, wo_ref, bo_ref,
                     ln1w_ref, ln1b_ref, w1_ref, b1_ref, w2_ref, b2_ref,
                     ln2w_ref, ln2b_ref, wf_ref, bf_ref, out_ref,
                     *, embed, nhead, head_dim):
    f32 = jnp.float32
    bf16 = jnp.bfloat16

    # ---- patch embedding: Conv2d(k=s=P) as matmul (bf16 x bf16 -> f32), +bias, ReLU,
    #      BatchNorm2d(eval) folded into per-channel scale/shift ----
    patches = patches_ref[0]                                               # (S, C*P*P) bf16
    emb = jnp.dot(patches, w_pe_ref[...], preferred_element_type=f32)      # (S, E)
    emb = jnp.maximum(emb + b_pe_ref[...], 0.0)
    emb = emb * bn_scale_ref[...] + bn_shift_ref[...]

    # ---- fused QKV projection ----
    qkv = jnp.dot(emb.astype(bf16), w_qkv_ref[...],
                  preferred_element_type=f32) + b_qkv_ref[...]             # (S, 3E)
    q = qkv[:, :embed]
    k = qkv[:, embed:2 * embed]
    v = qkv[:, 2 * embed:]

    # ---- multi-head self-attention: head-restricted contraction via lane-tile-aligned
    #      per-head slices; per-head output rows of W_out accumulated directly ----
    scale = 1.0 / (head_dim ** 0.5)
    attn = jnp.zeros(emb.shape, f32)
    for h in range(nhead):                                                 # static, nhead=2
        lo, hi = h * head_dim, (h + 1) * head_dim
        qh = (q[:, lo:hi] * scale).astype(bf16)                            # (S, Dh)
        kh = k[:, lo:hi].astype(bf16)
        vh = v[:, lo:hi].astype(bf16)
        s = jax.lax.dot_general(qh, kh, (((1,), (1,)), ((), ())),
                                preferred_element_type=f32)                # (S, S)
        s = s - jnp.max(s, axis=-1, keepdims=True)
        p = jnp.exp(s)
        p = p / jnp.sum(p, axis=-1, keepdims=True)                         # exact softmax
        o = jnp.dot(p.astype(bf16), vh, preferred_element_type=f32)        # (S, Dh)
        attn = attn + jnp.dot(o.astype(bf16), wo_ref[lo:hi, :],
                              preferred_element_type=f32)                  # (S, E)
    attn = attn + bo_ref[...]

    # ---- residual + LayerNorm1 (attention dropout = identity in eval) ----
    x1 = emb + attn
    mu = jnp.mean(x1, axis=-1, keepdims=True)
    var = jnp.mean((x1 - mu) ** 2, axis=-1, keepdims=True)
    x1 = (x1 - mu) * jax.lax.rsqrt(var + 1e-5) * ln1w_ref[...] + ln1b_ref[...]

    # ---- feed-forward: linear -> ReLU -> linear ----
    h1 = jnp.maximum(
        jnp.dot(x1.astype(bf16), w1_ref[...], preferred_element_type=f32) + b1_ref[...], 0.0)
    ff = jnp.dot(h1.astype(bf16), w2_ref[...], preferred_element_type=f32) + b2_ref[...]

    # ---- residual + LayerNorm2 ----
    x2 = x1 + ff
    mu2 = jnp.mean(x2, axis=-1, keepdims=True)
    var2 = jnp.mean((x2 - mu2) ** 2, axis=-1, keepdims=True)
    y = (x2 - mu2) * jax.lax.rsqrt(var2 + 1e-5) * ln2w_ref[...] + ln2b_ref[...]   # (S, E)

    # ---- mean over seq (torch: x.mean(dim=0)) as a sublane reduction, then classifier
    #      (Dropout(p=0.5) before fc is identity in eval mode) ----
    pooled = jnp.mean(y, axis=0, keepdims=True)                            # (1, E)
    logits = jnp.dot(pooled.astype(bf16), wf_ref[...],
                     preferred_element_type=f32) + bf_ref[...]             # (1, NCLS_PAD)
    out_ref[0] = logits


def transformer_forward(patches, params, *, batch, seq, embed, nhead, nclasses_pad):
    _, _, p3 = patches.shape
    dff = params["w1"].shape[1]
    head_dim = embed // nhead

    def rep(shape):
        n = len(shape)
        return pl.BlockSpec(shape, lambda b, n=n: (0,) * n)   # resident across batch grid

    kernel = functools.partial(vit_fused_kernel, embed=embed, nhead=nhead,
                               head_dim=head_dim)
    out = pl.pallas_call(
        kernel,
        out_shape=jax.ShapeDtypeStruct((batch, 1, nclasses_pad), jnp.float32),
        grid=(batch,),
        in_specs=[
            pl.BlockSpec((1, seq, p3), lambda b: (b, 0, 0)),
            rep((p3, embed)), rep((1, embed)), rep((1, embed)), rep((1, embed)),
            rep((embed, 3 * embed)), rep((1, 3 * embed)),
            rep((embed, embed)), rep((1, embed)),
            rep((1, embed)), rep((1, embed)),
            rep((embed, dff)), rep((1, dff)),
            rep((dff, embed)), rep((1, embed)),
            rep((1, embed)), rep((1, embed)),
            rep((embed, nclasses_pad)), rep((1, nclasses_pad)),
        ],
        out_specs=pl.BlockSpec((1, 1, nclasses_pad), lambda b: (b, 0, 0)),
        compiler_params=pltpu.CompilerParams(
            dimension_semantics=("parallel",),            # megacore split on v7x
            vmem_limit_bytes=32 * 1024 * 1024),
    )(patches,
      params["w_pe"], params["b_pe"], params["bn_scale"], params["bn_shift"],
      params["w_qkv"], params["b_qkv"], params["wo"], params["bo"],
      params["ln1w"], params["ln1b"], params["w1"], params["b1"],
      params["w2"], params["b2"], params["ln2w"], params["ln2b"],
      params["wf"], params["bf"])
    return out[:, 0, :]                                    # (B, NCLS_PAD)


def forward(x, params, *, patch_size, embed, nhead, nclasses):
    B, C, H, W = x.shape
    P = patch_size
    Hp, Wp = H // P, W // P
    S = Hp * Wp
    # Non-overlapping patch extraction (conv stride == kernel) — pure layout glue in XLA.
    patches = (x.reshape(B, C, Hp, P, Wp, P)
                 .transpose(0, 2, 4, 1, 3, 5)              # (B, Hp, Wp, C, P, P)
                 .reshape(B, S, C * P * P)).astype(jnp.bfloat16)
    nclasses_pad = params["wf"].shape[1]
    logits_pad = transformer_forward(patches, params, batch=B, seq=S, embed=embed,
                                     nhead=nhead, nclasses_pad=nclasses_pad)
    return logits_pad[:, :nclasses]                        # drop lane padding


if __name__ == "__main__":
    # Small config consistent with the module: embed_dim=256, nhead=2, nclasses=8,
    # spatial / patch / feed-forward scaled down (dim_feedforward 2048 -> 512).
    B, C_in, H, W = 2, 3, 32, 32
    P = 8            # patch_size (spec: 32, scaled down with the image)
    E = 256          # embed_dim
    NHEAD = 2        # num_heads
    DFF = 512        # feed-forward hidden
    NCLS = 8         # num_classes
    NCLS_PAD = 128   # lane-dense classifier output, sliced to NCLS outside the kernel

    key = jax.random.PRNGKey(0)
    ks = jax.random.split(key, 20)
    init = lambda k, shape, s=0.02: (s * jax.random.normal(k, shape)).astype(jnp.float32)

    # input image batch, NCHW (as PyTorch)
    x = jax.random.normal(ks[0], (B, C_in, H, W), dtype=jnp.float32)

    # --- embedding params: Conv2d(3->E, k=P, s=P), BatchNorm2d(E) (eval, folded) ---
    conv_w = init(ks[1], (E, C_in, P, P), 0.05)
    conv_b = init(ks[2], (E,), 0.05)
    bn_gamma = (1.0 + 0.1 * jax.random.normal(ks[3], (E,))).astype(jnp.float32)
    bn_beta = (0.1 * jax.random.normal(ks[4], (E,))).astype(jnp.float32)
    bn_mean = (0.1 * jax.random.normal(ks[5], (E,))).astype(jnp.float32)
    bn_var = (1.0 + 0.1 * jnp.abs(jax.random.normal(ks[6], (E,)))).astype(jnp.float32)
    bn_scale = bn_gamma / jnp.sqrt(bn_var + 1e-5)
    bn_shift = bn_beta - bn_mean * bn_scale

    # --- TransformerEncoderLayer params (num_layers = 1, post-LN, ReLU FFN) ---
    in_proj_w = init(ks[7], (3 * E, E))          # [Wq; Wk; Wv]
    in_proj_b = init(ks[8], (3 * E,))
    out_proj_w = init(ks[9], (E, E))
    out_proj_b = init(ks[10], (E,))
    lin1_w = init(ks[11], (DFF, E))
    lin1_b = init(ks[12], (DFF,))
    lin2_w = init(ks[13], (E, DFF))
    lin2_b = init(ks[14], (E,))
    ln1w = jnp.ones((E,), jnp.float32); ln1b = jnp.zeros((E,), jnp.float32)
    ln2w = jnp.ones((E,), jnp.float32); ln2b = jnp.zeros((E,), jnp.float32)

    # --- final classifier (padded to 128 output lanes for an unmasked store) ---
    fc_w = init(ks[15], (NCLS, E))
    fc_b = init(ks[16], (NCLS,))
    wf_pad = jnp.pad(fc_w.T, ((0, 0), (0, NCLS_PAD - NCLS)))
    bf_pad = jnp.pad(fc_b, ((0, NCLS_PAD - NCLS),))

    bf16 = jnp.bfloat16
    params = dict(
        # bf16 matmul operands (halves weight DMA, feeds the MXU at bf16 rate)
        w_pe=conv_w.reshape(E, C_in * P * P).T.astype(bf16),     # (C*P*P, E)
        w_qkv=in_proj_w.T.astype(bf16),                          # (E, 3E) cols [q | k | v]
        wo=out_proj_w.T.astype(bf16),                            # (E, E)
        w1=lin1_w.T.astype(bf16),                                # (E, DFF)
        w2=lin2_w.T.astype(bf16),                                # (DFF, E)
        wf=wf_pad.astype(bf16),                                  # (E, NCLS_PAD)
        # f32 biases / affine params
        b_pe=conv_b.reshape(1, E),
        bn_scale=bn_scale.reshape(1, E),
        bn_shift=bn_shift.reshape(1, E),
        b_qkv=in_proj_b.reshape(1, 3 * E),
        bo=out_proj_b.reshape(1, E),
        ln1w=ln1w.reshape(1, E), ln1b=ln1b.reshape(1, E),
        b1=lin1_b.reshape(1, DFF),
        b2=lin2_b.reshape(1, E),
        ln2w=ln2w.reshape(1, E), ln2b=ln2b.reshape(1, E),
        bf=bf_pad.reshape(1, NCLS_PAD),
    )

    fwd = jax.jit(functools.partial(forward, patch_size=P, embed=E,
                                    nhead=NHEAD, nclasses=NCLS))
    logits = fwd(x, params)                         # (B, NCLS)
    jax.block_until_ready(logits)
    assert logits.shape == (B, NCLS) and logits.dtype == jnp.float32
    print("KERNEL_OK")
</pallas_src>

<mosaic_0001>
module attributes {stable_mosaic.version = 11 : i64} {
  func.func @vit_fused_kernel(%arg0: i32, %arg1: memref<1x16x192xbf16, #tpu.memory_space<vmem>>, %arg2: memref<192x256xbf16, #tpu.memory_space<vmem>>, %arg3: memref<1x256xf32, #tpu.memory_space<vmem>>, %arg4: memref<1x256xf32, #tpu.memory_space<vmem>>, %arg5: memref<1x256xf32, #tpu.memory_space<vmem>>, %arg6: memref<256x768xbf16, #tpu.memory_space<vmem>>, %arg7: memref<1x768xf32, #tpu.memory_space<vmem>>, %arg8: memref<256x256xbf16, #tpu.memory_space<vmem>>, %arg9: memref<1x256xf32, #tpu.memory_space<vmem>>, %arg10: memref<1x256xf32, #tpu.memory_space<vmem>>, %arg11: memref<1x256xf32, #tpu.memory_space<vmem>>, %arg12: memref<256x512xbf16, #tpu.memory_space<vmem>>, %arg13: memref<1x512xf32, #tpu.memory_space<vmem>>, %arg14: memref<512x256xbf16, #tpu.memory_space<vmem>>, %arg15: memref<1x256xf32, #tpu.memory_space<vmem>>, %arg16: memref<1x256xf32, #tpu.memory_space<vmem>>, %arg17: memref<1x256xf32, #tpu.memory_space<vmem>>, %arg18: memref<256x128xbf16, #tpu.memory_space<vmem>>, %arg19: memref<1x128xf32, #tpu.memory_space<vmem>>, %arg20: memref<1x1x128xf32, #tpu.memory_space<vmem>>) attributes {dimension_semantics = [#tpu.dimension_semantics<parallel>], iteration_bounds = array<i64: 2>, scalar_prefetch = 0 : i64, scratch_operands = 0 : i64, tpu.core_type = #tpu.core_type<tc>, window_params = [{transform_indices = @transform_0, window_bounds = array<i64: 1, 16, 192>}, {pipeline_mode = #tpu.pipeline_mode<synchronous>, transform_indices = @transform_1, window_bounds = array<i64: 192, 256>}, {pipeline_mode = #tpu.pipeline_mode<synchronous>, transform_indices = @transform_2, window_bounds = array<i64: 1, 256>}, {pipeline_mode = #tpu.pipeline_mode<synchronous>, transform_indices = @transform_3, window_bounds = array<i64: 1, 256>}, {pipeline_mode = #tpu.pipeline_mode<synchronous>, transform_indices = @transform_4, window_bounds = array<i64: 1, 256>}, {pipeline_mode = #tpu.pipeline_mode<synchronous>, transform_indices = @transform_5, window_bounds = array<i64: 256, 768>}, {pipeline_mode = #tpu.pipeline_mode<synchronous>, transform_indices = @transform_6, window_bounds = array<i64: 1, 768>}, {pipeline_mode = #tpu.pipeline_mode<synchronous>, transform_indices = @transform_7, window_bounds = array<i64: 256, 256>}, {pipeline_mode = #tpu.pipeline_mode<synchronous>, transform_indices = @transform_8, window_bounds = array<i64: 1, 256>}, {pipeline_mode = #tpu.pipeline_mode<synchronous>, transform_indices = @transform_9, window_bounds = array<i64: 1, 256>}, {pipeline_mode = #tpu.pipeline_mode<synchronous>, transform_indices = @transform_10, window_bounds = array<i64: 1, 256>}, {pipeline_mode = #tpu.pipeline_mode<synchronous>, transform_indices = @transform_11, window_bounds = array<i64: 256, 512>}, {pipeline_mode = #tpu.pipeline_mode<synchronous>, transform_indices = @transform_12, window_bounds = array<i64: 1, 512>}, {pipeline_mode = #tpu.pipeline_mode<synchronous>, transform_indices = @transform_13, window_bounds = array<i64: 512, 256>}, {pipeline_mode = #tpu.pipeline_mode<synchronous>, transform_indices = @transform_14, window_bounds = array<i64: 1, 256>}, {pipeline_mode = #tpu.pipeline_mode<synchronous>, transform_indices = @transform_15, window_bounds = array<i64: 1, 256>}, {pipeline_mode = #tpu.pipeline_mode<synchronous>, transform_indices = @transform_16, window_bounds = array<i64: 1, 256>}, {pipeline_mode = #tpu.pipeline_mode<synchronous>, transform_indices = @transform_17, window_bounds = array<i64: 256, 128>}, {pipeline_mode = #tpu.pipeline_mode<synchronous>, transform_indices = @transform_18, window_bounds = array<i64: 1, 128>}, {transform_indices = @transform_19, window_bounds = array<i64: 1, 1, 128>}]} {
    %c0 = arith.constant 0 : index
    %c0_0 = arith.constant 0 : index
    %c0_1 = arith.constant 0 : index
    %0 = vector.load %arg1[%c0, %c0_0, %c0_1] : memref<1x16x192xbf16, #tpu.memory_space<vmem>>, vector<1x16x192xbf16>
    %1 = vector.shape_cast %0 : vector<1x16x192xbf16> to vector<16x192xbf16>
    %c0_2 = arith.constant 0 : index
    %c0_3 = arith.constant 0 : index
    %2 = vector.load %arg2[%c0_2, %c0_3] : memref<192x256xbf16, #tpu.memory_space<vmem>>, vector<192x256xbf16>
    %cst = arith.constant dense<0.000000e+00> : vector<16x256xf32>
    %3 = tpu.matmul %1, %2, %cst {dimension_numbers = #tpu.dot_dimension_numbers<[1], [0], [0], [1], [0, 0, 1, 1], [], []>} : vector<16x192xbf16>, vector<192x256xbf16>, vector<16x256xf32> -> vector<16x256xf32>
    %c0_4 = arith.constant 0 : index
    %c0_5 = arith.constant 0 : index
    %4 = vector.load %arg3[%c0_4, %c0_5] : memref<1x256xf32, #tpu.memory_space<vmem>>, vector<1x256xf32>
    %5 = vector.broadcast %4 : vector<1x256xf32> to vector<16x256xf32>
    %6 = arith.addf %3, %5 : vector<16x256xf32>
    %cst_6 = arith.constant 0.000000e+00 : f32
    %7 = vector.broadcast %cst_6 : f32 to vector<16x256xf32>
    %8 = arith.maximumf %6, %7 : vector<16x256xf32>
    %c0_7 = arith.constant 0 : index
    %c0_8 = arith.constant 0 : index
    %9 = vector.load %arg4[%c0_7, %c0_8] : memref<1x256xf32, #tpu.memory_space<vmem>>, vector<1x256xf32>
    %10 = vector.broadcast %9 : vector<1x256xf32> to vector<16x256xf32>
    %11 = arith.mulf %8, %10 : vector<16x256xf32>
    %c0_9 = arith.constant 0 : index
    %c0_10 = arith.constant 0 : index
    %12 = vector.load %arg5[%c0_9, %c0_10] : memref<1x256xf32, #tpu.memory_space<vmem>>, vector<1x256xf32>
    %13 = vector.broadcast %12 : vector<1x256xf32> to vector<16x256xf32>
    %14 = arith.addf %11, %13 : vector<16x256xf32>
    %15 = arith.truncf %14 : vector<16x256xf32> to vector<16x256xbf16>
    %c0_11 = arith.constant 0 : index
    %c0_12 = arith.constant 0 : index
    %16 = vector.load %arg6[%c0_11, %c0_12] : memref<256x768xbf16, #tpu.memory_space<vmem>>, vector<256x768xbf16>
    %cst_13 = arith.constant dense<0.000000e+00> : vector<16x768xf32>
    %17 = tpu.matmul %15, %16, %cst_13 {dimension_numbers = #tpu.dot_dimension_numbers<[1], [0], [0], [1], [0, 0, 1, 1], [], []>} : vector<16x256xbf16>, vector<256x768xbf16>, vector<16x768xf32> -> vector<16x768xf32>
    %c0_14 = arith.constant 0 : index
    %c0_15 = arith.constant 0 : index
    %18 = vector.load %arg7[%c0_14, %c0_15] : memref<1x768xf32, #tpu.memory_space<vmem>>, vector<1x768xf32>
    %19 = vector.broadcast %18 : vector<1x768xf32> to vector<16x768xf32>
    %20 = arith.addf %17, %19 : vector<16x768xf32>
    %21 = vector.extract_strided_slice %20 {offsets = [0, 0], sizes = [16, 256], strides = [1, 1]} : vector<16x768xf32> to vector<16x256xf32>
    %22 = vector.extract_strided_slice %20 {offsets = [0, 256], sizes = [16, 256], strides = [1, 1]} : vector<16x768xf32> to vector<16x256xf32>
    %23 = vector.extract_strided_slice %20 {offsets = [0, 512], sizes = [16, 256], strides = [1, 1]} : vector<16x768xf32> to vector<16x256xf32>
    %cst_16 = arith.constant 0.000000e+00 : f32
    %24 = vector.broadcast %cst_16 : f32 to vector<16x256xf32>
    %25 = vector.extract_strided_slice %21 {offsets = [0, 0], sizes = [16, 128], strides = [1, 1]} : vector<16x256xf32> to vector<16x128xf32>
    %cst_17 = arith.constant 0.0883883461 : f32
    %26 = vector.broadcast %cst_17 : f32 to vector<16x128xf32>
    %27 = arith.mulf %25, %26 : vector<16x128xf32>
    %28 = arith.truncf %27 : vector<16x128xf32> to vector<16x128xbf16>
    %29 = vector.extract_strided_slice %22 {offsets = [0, 0], sizes = [16, 128], strides = [1, 1]} : vector<16x256xf32> to vector<16x128xf32>
    %30 = arith.truncf %29 : vector<16x128xf32> to vector<16x128xbf16>
    %31 = vector.extract_strided_slice %23 {offsets = [0, 0], sizes = [16, 128], strides = [1, 1]} : vector<16x256xf32> to vector<16x128xf32>
    %32 = arith.truncf %31 : vector<16x128xf32> to vector<16x128xbf16>
    %cst_18 = arith.constant dense<0.000000e+00> : vector<16x16xf32>
    %33 = tpu.matmul %28, %30, %cst_18 {dimension_numbers = #tpu.dot_dimension_numbers<[1], [1], [0], [0], [0, 0, 1, 0], [], []>} : vector<16x128xbf16>, vector<16x128xbf16>, vector<16x16xf32> -> vector<16x16xf32>
    %cst_19 = arith.constant dense<0xFF800000> : vector<16xf32>
    %34 = vector.multi_reduction <maximumf>, %33, %cst_19 [1] : vector<16x16xf32> to vector<16xf32>
    %35 = vector.shape_cast %34 : vector<16xf32> to vector<16x1xf32>
    %36 = vector.broadcast %35 : vector<16x1xf32> to vector<16x16xf32>
    %37 = arith.subf %33, %36 : vector<16x16xf32>
    %38 = math.exp %37 : vector<16x16xf32>
    %cst_20 = arith.constant dense<0.000000e+00> : vector<16xf32>
    %39 = vector.multi_reduction <add>, %38, %cst_20 [1] : vector<16x16xf32> to vector<16xf32>
    %40 = vector.shape_cast %39 : vector<16xf32> to vector<16x1xf32>
    %41 = vector.broadcast %40 : vector<16x1xf32> to vector<16x16xf32>
    %42 = arith.divf %38, %41 : vector<16x16xf32>
    %43 = arith.truncf %42 : vector<16x16xf32> to vector<16x16xbf16>
    %cst_21 = arith.constant dense<0.000000e+00> : vector<16x128xf32>
    %44 = tpu.matmul %43, %32, %cst_21 {dimension_numbers = #tpu.dot_dimension_numbers<[1], [0], [0], [1], [0, 0, 1, 1], [], []>} : vector<16x16xbf16>, vector<16x128xbf16>, vector<16x128xf32> -> vector<16x128xf32>
    %45 = arith.truncf %44 : vector<16x128xf32> to vector<16x128xbf16>
    %c0_22 = arith.constant 0 : index
    %c0_23 = arith.constant 0 : index
    %46 = vector.load %arg8[%c0_22, %c0_23] : memref<256x256xbf16, #tpu.memory_space<vmem>>, vector<128x256xbf16>
    %cst_24 = arith.constant dense<0.000000e+00> : vector<16x256xf32>
    %47 = tpu.matmul %45, %46, %cst_24 {dimension_numbers = #tpu.dot_dimension_numbers<[1], [0], [0], [1], [0, 0, 1, 1], [], []>} : vector<16x128xbf16>, vector<128x256xbf16>, vector<16x256xf32> -> vector<16x256xf32>
    %48 = arith.addf %24, %47 : vector<16x256xf32>
    %49 = vector.extract_strided_slice %21 {offsets = [0, 128], sizes = [16, 128], strides = [1, 1]} : vector<16x256xf32> to vector<16x128xf32>
    %cst_25 = arith.constant 0.0883883461 : f32
    %50 = vector.broadcast %cst_25 : f32 to vector<16x128xf32>
    %51 = arith.mulf %49, %50 : vector<16x128xf32>
    %52 = arith.truncf %51 : vector<16x128xf32> to vector<16x128xbf16>
    %53 = vector.extract_strided_slice %22 {offsets = [0, 128], sizes = [16, 128], strides = [1, 1]} : vector<16x256xf32> to vector<16x128xf32>
    %54 = arith.truncf %53 : vector<16x128xf32> to vector<16x128xbf16>
    %55 = vector.extract_strided_slice %23 {offsets = [0, 128], sizes = [16, 128], strides = [1, 1]} : vector<16x256xf32> to vector<16x128xf32>
    %56 = arith.truncf %55 : vector<16x128xf32> to vector<16x128xbf16>
    %cst_26 = arith.constant dense<0.000000e+00> : vector<16x16xf32>
    %57 = tpu.matmul %52, %54, %cst_26 {dimension_numbers = #tpu.dot_dimension_numbers<[1], [1], [0], [0], [0, 0, 1, 0], [], []>} : vector<16x128xbf16>, vector<16x128xbf16>, vector<16x16xf32> -> vector<16x16xf32>
    %cst_27 = arith.constant dense<0xFF800000> : vector<16xf32>
    %58 = vector.multi_reduction <maximumf>, %57, %cst_27 [1] : vector<16x16xf32> to vector<16xf32>
    %59 = vector.shape_cast %58 : vector<16xf32> to vector<16x1xf32>
    %60 = vector.broadcast %59 : vector<16x1xf32> to vector<16x16xf32>
    %61 = arith.subf %57, %60 : vector<16x16xf32>
    %62 = math.exp %61 : vector<16x16xf32>
    %cst_28 = arith.constant dense<0.000000e+00> : vector<16xf32>
    %63 = vector.multi_reduction <add>, %62, %cst_28 [1] : vector<16x16xf32> to vector<16xf32>
    %64 = vector.shape_cast %63 : vector<16xf32> to vector<16x1xf32>
    %65 = vector.broadcast %64 : vector<16x1xf32> to vector<16x16xf32>
    %66 = arith.divf %62, %65 : vector<16x16xf32>
    %67 = arith.truncf %66 : vector<16x16xf32> to vector<16x16xbf16>
    %cst_29 = arith.constant dense<0.000000e+00> : vector<16x128xf32>
    %68 = tpu.matmul %67, %56, %cst_29 {dimension_numbers = #tpu.dot_dimension_numbers<[1], [0], [0], [1], [0, 0, 1, 1], [], []>} : vector<16x16xbf16>, vector<16x128xbf16>, vector<16x128xf32> -> vector<16x128xf32>
    %69 = arith.truncf %68 : vector<16x128xf32> to vector<16x128xbf16>
    %c128 = arith.constant 128 : index
    %c0_30 = arith.constant 0 : index
    %70 = vector.load %arg8[%c128, %c0_30] : memref<256x256xbf16, #tpu.memory_space<vmem>>, vector<128x256xbf16>
    %cst_31 = arith.constant dense<0.000000e+00> : vector<16x256xf32>
    %71 = tpu.matmul %69, %70, %cst_31 {dimension_numbers = #tpu.dot_dimension_numbers<[1], [0], [0], [1], [0, 0, 1, 1], [], []>} : vector<16x128xbf16>, vector<128x256xbf16>, vector<16x256xf32> -> vector<16x256xf32>
    %72 = arith.addf %48, %71 : vector<16x256xf32>
    %c0_32 = arith.constant 0 : index
    %c0_33 = arith.constant 0 : index
    %73 = vector.load %arg9[%c0_32, %c0_33] : memref<1x256xf32, #tpu.memory_space<vmem>>, vector<1x256xf32>
    %74 = vector.broadcast %73 : vector<1x256xf32> to vector<16x256xf32>
    %75 = arith.addf %72, %74 : vector<16x256xf32>
    %76 = arith.addf %14, %75 : vector<16x256xf32>
    %cst_34 = arith.constant dense<0.000000e+00> : vector<16xf32>
    %77 = vector.multi_reduction <add>, %76, %cst_34 [1] : vector<16x256xf32> to vector<16xf32>
    %78 = vector.shape_cast %77 : vector<16xf32> to vector<16x1xf32>
    %cst_35 = arith.constant 2.560000e+02 : f32
    %79 = vector.broadcast %cst_35 : f32 to vector<16x1xf32>
    %80 = arith.divf %78, %79 : vector<16x1xf32>
    %81 = vector.broadcast %80 : vector<16x1xf32> to vector<16x256xf32>
    %82 = arith.subf %76, %81 : vector<16x256xf32>
    %83 = arith.mulf %82, %82 : vector<16x256xf32>
    %cst_36 = arith.constant dense<0.000000e+00> : vector<16xf32>
    %84 = vector.multi_reduction <add>, %83, %cst_36 [1] : vector<16x256xf32> to vector<16xf32>
    %85 = vector.shape_cast %84 : vector<16xf32> to vector<16x1xf32>
    %cst_37 = arith.constant 2.560000e+02 : f32
    %86 = vector.broadcast %cst_37 : f32 to vector<16x1xf32>
    %87 = arith.divf %85, %86 : vector<16x1xf32>
    %88 = vector.broadcast %80 : vector<16x1xf32> to vector<16x256xf32>
    %89 = arith.subf %76, %88 : vector<16x256xf32>
    %cst_38 = arith.constant 9.99999974E-6 : f32
    %90 = vector.broadcast %cst_38 : f32 to vector<16x1xf32>
    %91 = arith.addf %87, %90 : vector<16x1xf32>
    %92 = math.rsqrt %91 : vector<16x1xf32>
    %93 = vector.broadcast %92 : vector<16x1xf32> to vector<16x256xf32>
    %94 = arith.mulf %89, %93 : vector<16x256xf32>
    %c0_39 = arith.constant 0 : index
    %c0_40 = arith.constant 0 : index
    %95 = vector.load %arg10[%c0_39, %c0_40] : memref<1x256xf32, #tpu.memory_space<vmem>>, vector<1x256xf32>
    %96 = vector.broadcast %95 : vector<1x256xf32> to vector<16x256xf32>
    %97 = arith.mulf %94, %96 : vector<16x256xf32>
    %c0_41 = arith.constant 0 : index
    %c0_42 = arith.constant 0 : index
    %98 = vector.load %arg11[%c0_41, %c0_42] : memref<1x256xf32, #tpu.memory_space<vmem>>, vector<1x256xf32>
    %99 = vector.broadcast %98 : vector<1x256xf32> to vector<16x256xf32>
    %100 = arith.addf %97, %99 : vector<16x256xf32>
    %101 = arith.truncf %100 : vector<16x256xf32> to vector<16x256xbf16>
    %c0_43 = arith.constant 0 : index
    %c0_44 = arith.constant 0 : index
    %102 = vector.load %arg12[%c0_43, %c0_44] : memref<256x512xbf16, #tpu.memory_space<vmem>>, vector<256x512xbf16>
    %cst_45 = arith.constant dense<0.000000e+00> : vector<16x512xf32>
    %103 = tpu.matmul %101, %102, %cst_45 {dimension_numbers = #tpu.dot_dimension_numbers<[1], [0], [0], [1], [0, 0, 1, 1], [], []>} : vector<16x256xbf16>, vector<256x512xbf16>, vector<16x512xf32> -> vector<16x512xf32>
    %c0_46 = arith.constant 0 : index
    %c0_47 = arith.constant 0 : index
    %104 = vector.load %arg13[%c0_46, %c0_47] : memref<1x512xf32, #tpu.memory_space<vmem>>, vector<1x512xf32>
    %105 = vector.broadcast %104 : vector<1x512xf32> to vector<16x512xf32>
    %106 = arith.addf %103, %105 : vector<16x512xf32>
    %cst_48 = arith.constant 0.000000e+00 : f32
    %107 = vector.broadcast %cst_48 : f32 to vector<16x512xf32>
    %108 = arith.maximumf %106, %107 : vector<16x512xf32>
    %109 = arith.truncf %108 : vector<16x512xf32> to vector<16x512xbf16>
    %c0_49 = arith.constant 0 : index
    %c0_50 = arith.constant 0 : index
    %110 = vector.load %arg14[%c0_49, %c0_50] : memref<512x256xbf16, #tpu.memory_space<vmem>>, vector<512x256xbf16>
    %cst_51 = arith.constant dense<0.000000e+00> : vector<16x256xf32>
    %111 = tpu.matmul %109, %110, %cst_51 {dimension_numbers = #tpu.dot_dimension_numbers<[1], [0], [0], [1], [0, 0, 1, 1], [], []>} : vector<16x512xbf16>, vector<512x256xbf16>, vector<16x256xf32> -> vector<16x256xf32>
    %c0_52 = arith.constant 0 : index
    %c0_53 = arith.constant 0 : index
    %112 = vector.load %arg15[%c0_52, %c0_53] : memref<1x256xf32, #tpu.memory_space<vmem>>, vector<1x256xf32>
    %113 = vector.broadcast %112 : vector<1x256xf32> to vector<16x256xf32>
    %114 = arith.addf %111, %113 : vector<16x256xf32>
    %115 = arith.addf %100, %114 : vector<16x256xf32>
    %cst_54 = arith.constant dense<0.000000e+00> : vector<16xf32>
    %116 = vector.multi_reduction <add>, %115, %cst_54 [1] : vector<16x256xf32> to vector<16xf32>
    %117 = vector.shape_cast %116 : vector<16xf32> to vector<16x1xf32>
    %cst_55 = arith.constant 2.560000e+02 : f32
    %118 = vector.broadcast %cst_55 : f32 to vector<16x1xf32>
    %119 = arith.divf %117, %118 : vector<16x1xf32>
    %120 = vector.broadcast %119 : vector<16x1xf32> to vector<16x256xf32>
    %121 = arith.subf %115, %120 : vector<16x256xf32>
    %122 = arith.mulf %121, %121 : vector<16x256xf32>
    %cst_56 = arith.constant dense<0.000000e+00> : vector<16xf32>
    %123 = vector.multi_reduction <add>, %122, %cst_56 [1] : vector<16x256xf32> to vector<16xf32>
    %124 = vector.shape_cast %123 : vector<16xf32> to vector<16x1xf32>
    %cst_57 = arith.constant 2.560000e+02 : f32
    %125 = vector.broadcast %cst_57 : f32 to vector<16x1xf32>
    %126 = arith.divf %124, %125 : vector<16x1xf32>
    %127 = vector.broadcast %119 : vector<16x1xf32> to vector<16x256xf32>
    %128 = arith.subf %115, %127 : vector<16x256xf32>
    %cst_58 = arith.constant 9.99999974E-6 : f32
    %129 = vector.broadcast %cst_58 : f32 to vector<16x1xf32>
    %130 = arith.addf %126, %129 : vector<16x1xf32>
    %131 = math.rsqrt %130 : vector<16x1xf32>
    %132 = vector.broadcast %131 : vector<16x1xf32> to vector<16x256xf32>
    %133 = arith.mulf %128, %132 : vector<16x256xf32>
    %c0_59 = arith.constant 0 : index
    %c0_60 = arith.constant 0 : index
    %134 = vector.load %arg16[%c0_59, %c0_60] : memref<1x256xf32, #tpu.memory_space<vmem>>, vector<1x256xf32>
    %135 = vector.broadcast %134 : vector<1x256xf32> to vector<16x256xf32>
    %136 = arith.mulf %133, %135 : vector<16x256xf32>
    %c0_61 = arith.constant 0 : index
    %c0_62 = arith.constant 0 : index
    %137 = vector.load %arg17[%c0_61, %c0_62] : memref<1x256xf32, #tpu.memory_space<vmem>>, vector<1x256xf32>
    %138 = vector.broadcast %137 : vector<1x256xf32> to vector<16x256xf32>
    %139 = arith.addf %136, %138 : vector<16x256xf32>
    %cst_63 = arith.constant dense<0.000000e+00> : vector<256xf32>
    %140 = vector.multi_reduction <add>, %139, %cst_63 [0] : vector<16x256xf32> to vector<256xf32>
    %141 = vector.shape_cast %140 : vector<256xf32> to vector<1x256xf32>
    %cst_64 = arith.constant 1.600000e+01 : f32
    %142 = vector.broadcast %cst_64 : f32 to vector<1x256xf32>
    %143 = arith.divf %141, %142 : vector<1x256xf32>
    %144 = arith.truncf %143 : vector<1x256xf32> to vector<1x256xbf16>
    %c0_65 = arith.constant 0 : index
    %c0_66 = arith.constant 0 : index
    %145 = vector.load %arg18[%c0_65, %c0_66] : memref<256x128xbf16, #tpu.memory_space<vmem>>, vector<256x128xbf16>
    %cst_67 = arith.constant dense<0.000000e+00> : vector<1x128xf32>
    %146 = tpu.matmul %144, %145, %cst_67 {dimension_numbers = #tpu.dot_dimension_numbers<[1], [0], [0], [1], [0, 0, 1, 1], [], []>} : vector<1x256xbf16>, vector<256x128xbf16>, vector<1x128xf32> -> vector<1x128xf32>
    %c0_68 = arith.constant 0 : index
    %c0_69 = arith.constant 0 : index
    %147 = vector.load %arg19[%c0_68, %c0_69] : memref<1x128xf32, #tpu.memory_space<vmem>>, vector<1x128xf32>
    %148 = arith.addf %146, %147 : vector<1x128xf32>
    %c0_70 = arith.constant 0 : index
    %c0_71 = arith.constant 0 : index
    %c0_72 = arith.constant 0 : index
    %149 = vector.load %arg20[%c0_70, %c0_71, %c0_72] : memref<1x1x128xf32, #tpu.memory_space<vmem>>, vector<1x1x128xf32>
    %150 = vector.shape_cast %149 : vector<1x1x128xf32> to vector<1x128xf32>
    %151 = vector.shape_cast %148 : vector<1x128xf32> to vector<1x1x128xf32>
    tpu.vector_store %arg20[%c0_70, %c0_71, %c0_72], %151 {strides = array<i32>} : memref<1x1x128xf32, #tpu.memory_space<vmem>>, vector<1x1x128xf32>,
    return
  }
  func.func @transform_0(%arg0: i32) -> (i32, i32, i32) {
    %c0_i32 = arith.constant 0 : i32
    %c0_i32_0 = arith.constant 0 : i32
    %c0_i32_1 = arith.constant 0 : i32
    return %arg0, %c0_i32, %c0_i32_0 : i32, i32, i32
  }
  func.func @transform_1(%arg0: i32) -> (i32, i32) {
    %c0_i32 = arith.constant 0 : i32
    %c0_i32_0 = arith.constant 0 : i32
    %c0_i32_1 = arith.constant 0 : i32
    return %c0_i32, %c0_i32_0 : i32, i32
  }
  func.func @transform_2(%arg0: i32) -> (i32, i32) {
    %c0_i32 = arith.constant 0 : i32
    %c0_i32_0 = arith.constant 0 : i32
    %c0_i32_1 = arith.constant 0 : i32
    return %c0_i32, %c0_i32_0 : i32, i32
  }
  func.func @transform_3(%arg0: i32) -> (i32, i32) {
    %c0_i32 = arith.constant 0 : i32
    %c0_i32_0 = arith.constant 0 : i32
    %c0_i32_1 = arith.constant 0 : i32
    return %c0_i32, %c0_i32_0 : i32, i32
  }
  func.func @transform_4(%arg0: i32) -> (i32, i32) {
    %c0_i32 = arith.constant 0 : i32
    %c0_i32_0 = arith.constant 0 : i32
    %c0_i32_1 = arith.constant 0 : i32
    return %c0_i32, %c0_i32_0 : i32, i32
  }
  func.func @transform_5(%arg0: i32) -> (i32, i32) {
    %c0_i32 = arith.constant 0 : i32
    %c0_i32_0 = arith.constant 0 : i32
    %c0_i32_1 = arith.constant 0 : i32
    return %c0_i32, %c0_i32_0 : i32, i32
  }
  func.func @transform_6(%arg0: i32) -> (i32, i32) {
    %c0_i32 = arith.constant 0 : i32
    %c0_i32_0 = arith.constant 0 : i32
    %c0_i32_1 = arith.constant 0 : i32
    return %c0_i32, %c0_i32_0 : i32, i32
  }
  func.func @transform_7(%arg0: i32) -> (i32, i32) {
    %c0_i32 = arith.constant 0 : i32
    %c0_i32_0 = arith.constant 0 : i32
    %c0_i32_1 = arith.constant 0 : i32
    return %c0_i32, %c0_i32_0 : i32, i32
  }
  func.func @transform_8(%arg0: i32) -> (i32, i32) {
    %c0_i32 = arith.constant 0 : i32
    %c0_i32_0 = arith.constant 0 : i32
    %c0_i32_1 = arith.constant 0 : i32
    return %c0_i32, %c0_i32_0 : i32, i32
  }
  func.func @transform_9(%arg0: i32) -> (i32, i32) {
    %c0_i32 = arith.constant 0 : i32
    %c0_i32_0 = arith.constant 0 : i32
    %c0_i32_1 = arith.constant 0 : i32
    return %c0_i32, %c0_i32_0 : i32, i32
  }
  func.func @transform_10(%arg0: i32) -> (i32, i32) {
    %c0_i32 = arith.constant 0 : i32
    %c0_i32_0 = arith.constant 0 : i32
    %c0_i32_1 = arith.constant 0 : i32
    return %c0_i32, %c0_i32_0 : i32, i32
  }
  func.func @transform_11(%arg0: i32) -> (i32, i32) {
    %c0_i32 = arith.constant 0 : i32
    %c0_i32_0 = arith.constant 0 : i32
    %c0_i32_1 = arith.constant 0 : i32
    return %c0_i32, %c0_i32_0 : i32, i32
  }
  func.func @transform_12(%arg0: i32) -> (i32, i32) {
    %c0_i32 = arith.constant 0 : i32
    %c0_i32_0 = arith.constant 0 : i32
    %c0_i32_1 = arith.constant 0 : i32
    return %c0_i32, %c0_i32_0 : i32, i32
  }
  func.func @transform_13(%arg0: i32) -> (i32, i32) {
    %c0_i32 = arith.constant 0 : i32
    %c0_i32_0 = arith.constant 0 : i32
    %c0_i32_1 = arith.constant 0 : i32
    return %c0_i32, %c0_i32_0 : i32, i32
  }
  func.func @transform_14(%arg0: i32) -> (i32, i32) {
    %c0_i32 = arith.constant 0 : i32
    %c0_i32_0 = arith.constant 0 : i32
    %c0_i32_1 = arith.constant 0 : i32
    return %c0_i32, %c0_i32_0 : i32, i32
  }
  func.func @transform_15(%arg0: i32) -> (i32, i32) {
    %c0_i32 = arith.constant 0 : i32
    %c0_i32_0 = arith.constant 0 : i32
    %c0_i32_1 = arith.constant 0 : i32
    return %c0_i32, %c0_i32_0 : i32, i32
  }
  func.func @transform_16(%arg0: i32) -> (i32, i32) {
    %c0_i32 = arith.constant 0 : i32
    %c0_i32_0 = arith.constant 0 : i32
    %c0_i32_1 = arith.constant 0 : i32
    return %c0_i32, %c0_i32_0 : i32, i32
  }
  func.func @transform_17(%arg0: i32) -> (i32, i32) {
    %c0_i32 = arith.constant 0 : i32
    %c0_i32_0 = arith.constant 0 : i32
    %c0_i32_1 = arith.constant 0 : i32
    return %c0_i32, %c0_i32_0 : i32, i32
  }
  func.func @transform_18(%arg0: i32) -> (i32, i32) {
    %c0_i32 = arith.constant 0 : i32
    %c0_i32_0 = arith.constant 0 : i32
    %c0_i32_1 = arith.constant 0 : i32
    return %c0_i32, %c0_i32_0 : i32, i32
  }
  func.func @transform_19(%arg0: i32) -> (i32, i32, i32) {
    %c0_i32 = arith.constant 0 : i32
    %c0_i32_0 = arith.constant 0 : i32
    %c0_i32_1 = arith.constant 0 : i32
    return %arg0, %c0_i32, %c0_i32_0 : i32, i32, i32
  }
}

</mosaic_0001>

<bundles_post_ra>
// kernel: forward.1
= control target key start
LH: loop header
LB: loop body
LE: loop exit
PB: predicated region body
PF: predicated region fallthrough
CT: control target
= control target key end

     0   :  { %s5719_s0 = inlined_call_operand.vmem [shape: bf16[2,16,192], index: 0, kind: input, shape index: {}]   ;;  %s5720_s1 = inlined_call_operand.hbm [shape: bf16[192,256], index: 1, kind: input, shape index: {}]   ;;  %s5721_s2 = inlined_call_operand.vmem [shape: f32[1,256], index: 2, kind: input, shape index: {}]   ;;  %s5722_s3 = inlined_call_operand.vmem [shape: f32[1,256], index: 3, kind: input, shape index: {}]   ;;  %s5723_s4 = inlined_call_operand.vmem [shape: f32[1,256], index: 4, kind: input, shape index: {}]   ;;  %s5724_s5 = inlined_call_operand.vmem [shape: bf16[256,768], index: 5, kind: input, shape index: {}]   ;;  %s5725_s6 = inlined_call_operand.vmem [shape: f32[1,768], index: 6, kind: input, shape index: {}]   ;;  %s5726_s7 = inlined_call_operand.hbm [shape: bf16[256,256], index: 7, kind: input, shape index: {}]   ;;  %s5727_s8 = inlined_call_operand.vmem [shape: f32[1,256], index: 8, kind: input, shape index: {}]   ;;  %s5728_s9 = inlined_call_operand.vmem [shape: f32[1,256], index: 9, kind: input, shape index: {}]   ;;  %s5729_s10 = inlined_call_operand.vmem [shape: f32[1,256], index: 10, kind: input, shape index: {}]   ;;  %s5730_s11 = inlined_call_operand.vmem [shape: bf16[256,512], index: 11, kind: input, shape index: {}]   ;;  %s5731_s12 = inlined_call_operand.vmem [shape: f32[1,512], index: 12, kind: input, shape index: {}]   ;;  %s5732_s13 = inlined_call_operand.vmem [shape: bf16[512,256], index: 13, kind: input, shape index: {}]   ;;  %s5733_s14 = inlined_call_operand.vmem [shape: f32[1,256], index: 14, kind: input, shape index: {}]   ;;  %s5734_s15 = inlined_call_operand.vmem [shape: f32[1,256], index: 15, kind: input, shape index: {}]   ;;  %s5735_s16 = inlined_call_operand.vmem [shape: f32[1,256], index: 16, kind: input, shape index: {}]   ;;  %s5736_s17 = inlined_call_operand.vmem [shape: bf16[256,128], index: 17, kind: input, shape index: {}]   ;;  %s5737_s18 = inlined_call_operand.vmem [shape: f32[1,128], index: 18, kind: input, shape index: {}]   ;;  %s5738_s19 = inlined_call_operand.hbm [shape: f32[2,1,128], index: 19, kind: output, shape index: {}]  }
   0x1   :  { %5746 = sst [smem:[#allocation17_spill]] %s5719_s0 }
   0x2   :  { %5747 = sst [smem:[#allocation18_spill]] %s5720_s1 }
   0x3   :  { %5748 = sst [smem:[#allocation19_spill]] %s5721_s2 }
   0x4   :  { %5749 = sst [smem:[#allocation20_spill]] %s5722_s3 }
   0x5   :  { %24 = vsyncpa [#allocation3], 0 }
   0x6   :  { %25 = vsyncpa [#allocation6], 0 }
   0x7   :  { %26 = vsyncpa [#allocation4], 0 }
   0x8   :  { %28 = vsyncpa [#allocation4 + $0x1], 0  ;;  %s4674_s0 = smov 0   ;;  %s4676_s30 = smov 0  }
   0x9   :  { %s4678_s20 = smov 0   ;;  %s4680_s21 = smov 0  }
   0xa LB: > { %5750 = sst [smem:[#allocation11_spill]] %s4552_s0  ;;  %s4695_s1 = sadd.s32 4294967295, %s4564_s21   ;;  %s4564_s21 = sphi %s4680_s21, %s5772_s21   ;;  %s4560_s20 = sphi %s4678_s20, %s5774_s20   ;;  %s4556_s30 = sphi %s4676_s30, %s5776_s30   ;;  %s4552_s0 = sphi %s4674_s0, %s5775_s0  }
   0xb   : > { %5751 = sst [smem:[#allocation12_spill]] %s4560_s20  ;;  %s3547_s22 = sadd.s32 4294967294, %s4564_s21  }
   0xc   : > { %5752 = sst [smem:[#allocation13_spill]] %s4564_s21  ;;  %s4699_s2 = sadd.s32 1, %s4564_s21  }
   0xd   : > { %5753 = sst [smem:[#allocation14_spill]] %s4699_s2  ;;  %s445_s23 = sadd.s32 1, %s4560_s20 }
   0xe   : > { %s442_s24 = ssub.s32 %s4564_s21, %s4699_s2  ;;  %p455_p0 = scmp.ne.s32.totalorder %s4560_s20, %s4556_s30 }
   0xf   : > { %p443_p1 = scmp.eq.s32.totalorder %s442_s24, 0  ;;  %p456_p2 = scmp.eq.s32.totalorder %s4695_s1, 1 }
  0x10   : > { %p461_p3 = scmp.ne.s32.totalorder %s4556_s30, %s4552_s0  ;;  %p462_p4 = scmp.eq.s32.totalorder %s3547_s22, 1 }
  0x11   : > { %s4710_s25 = scalar_select %p443_p1, %s4560_s20, %s445_s23  }
  0x12   : > { %p4712_p5 = por %p456_p2, %p455_p0  ;;  %p4716_p6 = por %p462_p4, %p461_p3 }
  0x13   : > { %5754 = sst [smem:[#allocation15_spill]] %s4710_s25  ;;  %p3548_p7 = scmp.ge.s32.totalorder %s4564_s21, 1 }
  0x14   : > { %s5756_s26 = scalar_select %p4716_p6, 1, 0 }
  0x15   : > { %p469_p8 = scmp.lt.s32.totalorder %s4564_s21, 3  ;;  %p5744_p9 = scmp.eq.s32.totalorder %s4695_s1, 0 }
  0x16   : > { %5757 = sst [smem:[#allocation16_spill]] %s5756_s26  ;;  %s4566_s28 = smov [#allocation2]  }
  0x17   : > { %p4723_p10 = pnand %p3548_p7, %p469_p8  ;;  %s481_s29 = sshll.u32 %s4566_s28, 4  ;;  %s482_s29 = int_to_ptr.vmem [resolvable:$true] %s481_s29 }
  0x18   : > { %s4567_s23 = smov [#allocation5]   ;;  %s4455_s25 = scalar_lea.vmem %s482_s29, 3072 }
  0x19   : > { %p3926_p11 = pneg %p4723_p10  ;;  %s509_s24 = sshll.u32 %s4567_s23, 4  ;;  %s510_s24 = int_to_ptr.vmem [resolvable:$true] %s509_s24 }
  0x1a   : > { %p4456_p0 = scmp.ne.s32.totalorder %s482_s29, %s4455_s25  ;;  %p4463_p3 = scmp.lt.s32.totalorder %s482_s29, %s482_s29 }
  0x1b   : > { %p4731_p12 = pnand %p5744_p9, %p3926_p11  ;;  %p4464_p4 = scmp.lt.s32.totalorder %s4455_s25, %s4455_s25 }
  0x1d   : > { %p4446_p13 = pneg %p4731_p12  ;;  %p4465_p7 = por %p4464_p4, %p4463_p3 }
  0x1f   : > { %p4458_p1 = pnand %p4456_p0, %p4446_p13 }
  0x21   : > { %p4459_p2 = pneg %p4458_p1 }
  0x23   : > { %p4466_p8 = pnand %p4465_p7, %p4459_p2 }
  0x25   : > { %4469 = shalt.err (!%p4466_p8)
}
  0x26   : > { %s4568_s28 = smov 128   ;;  %s4569_s20 = smov 8  }
  0x27   : > { %s5760_s26 = sld [smem:[#allocation18_spill]]  ;;  %s4481_s0 = scalar_lea.vmem %s510_s24, 4096 }
  0x28   : > { %p4482_p11 = scmp.ne.s32.totalorder %s510_s24, %s4481_s0  ;;  %p4489_p9 = scmp.lt.s32.totalorder %s510_s24, %s510_s24 }
  0x29   : > { %p4490_p6 = scmp.lt.s32.totalorder %s4481_s0, %s4481_s0 }
  0x2a   : > { %p4484_p0 = pnand %p4482_p11, %p4446_p13 }
  0x2b   : > { %p4491_p3 = por %p4490_p6, %p4489_p9 }
  0x2c   : > { %p4485_p1 = pneg %p4484_p0 }
  0x2d   : > { %3929 = dma.hbm_to_vmem [thread:$0]  (!%p4731_p12), %s5760_s26, 3072, %s482_s29, [#allocation3], %s4568_s28, %s4568_s28, %s4569_s20  }
  0x2e   : > { %p4492_p2 = pnand %p4491_p3, %p4485_p1 }
  0x30   : > { %4495 = shalt.err (!%p4492_p2)
}
  0x31   : > { %3932 = dma.hbm_to_vmem [thread:$0]  (!%p4731_p12), %s5726_s7, 4096, %s510_s24, [#allocation6], %s4568_s28, %s4568_s28, %s4569_s20  }
  0x32   : > { %566 = sbr.rel (%p4723_p10) target bundleno = 2714 (0xa9a), region = 96  ;;  %p5761_p4 = scmp.eq.s32.totalorder (!%p4723_p10), %s4695_s1, 0 }
  0x37   : > { %4539 = dma.done.wait (%p5761_p4), [#allocation3], 3072   ;;  %p5762_p13 = pmov %p5761_p4 }
  0x38   : > { %p5763_p7 = pmov %p5761_p4 }
  0x39   : > { %4541 = vsyncadd (%p5762_p13), [#allocation3], 4294964224 }
  0x3a   : > { %4543 = dma.done.wait (%p5763_p7), [#allocation6], 4096   ;;  %p5764_p6 = pmov %p5761_p4 }
  0x3b   : > { %v3981_v0 = vld [vmem:[#allocation2 + $0x74] ss:$8 sps:$4 sm:$0xff]   ;;  %v3983_v1 = vld [vmem:[#allocation2 + $0x70] ss:$8 sps:$4 sm:$0xff]   ;;  %v3984_v2 = vld [vmem:[#allocation2 + $0x64] ss:$8 sps:$4 sm:$0xff]  }
  0x3c   : > { %4545 = vsyncadd (%p5764_p6), [#allocation6], 4294963200  ;;  %802 = vmatprep.subr.bf16.mxu0 %v3981_v0  ;;  %v3986_v3 = vld [vmem:[#allocation2 + $0x60] ss:$8 sps:$4 sm:$0xff]   ;;  %p625_p9 = scmp.lt.s32.totalorder %s4695_s1, 1  ;;  %s5765_s26 = sld [smem:[#allocation17_spill]] }
  0x3d   : > { %803 = vmatpush1.bf16.msra.mxu0 %v3983_v1  ;;  %v3987_v4 = vld [vmem:[#allocation2 + $0x54] ss:$8 sps:$4 sm:$0xff]   ;;  %v3989_v5 = vld [vmem:[#allocation2 + $0x50] ss:$8 sps:$4 sm:$0xff]   ;;  %v3990_v6 = vld [vmem:[#allocation2 + $0x44] ss:$8 sps:$4 sm:$0xff]  }
  0x3e   : > { %804 = vmatprep.subr.bf16.mxu0 %v3984_v2  ;;  %s626_s0 = scalar_select %p625_p9, %s4695_s1, 1  ;;  %v3992_v7 = vld [vmem:[#allocation2 + $0x40] ss:$8 sps:$4 sm:$0xff]   ;;  %v3993_v8 = vld [vmem:[#allocation2 + $0x34] ss:$8 sps:$4 sm:$0xff]   ;;  %vm798_vm0 = vcmask 523264  }
  0x3f   : > { %v3995_v9 = vld [vmem:[#allocation2 + $0x30] ss:$8 sps:$4 sm:$0xff]   ;;  %v3996_v10 = vld [vmem:[#allocation2 + $0x24] ss:$8 sps:$4 sm:$0xff]   ;;  %v3998_v14 = vld [vmem:[#allocation2 + $0x20] ss:$8 sps:$4 sm:$0xff]  }
  0x40   : > { %s3861_s20 = sshll.u32 %s626_s0, 4  ;;  %v4020_v12 = vld [vmem:[%s5724_s5 + $0x154] ss:$24 sps:$4 sm:$0xff]   ;;  %v4022_v13 = vld [vmem:[%s5724_s5 + $0x150] ss:$24 sps:$4 sm:$0xff]   ;;  %s5766_s28 = sld [smem:[#allocation19_spill]] }
  0x41   : > { %805 = vmatpush1.bf16.msra.mxu0 %v3986_v3  ;;  %v3999_v15 = vld [vmem:[#allocation2 + $0x14] ss:$8 sps:$4 sm:$0xff]   ;;  %1491 = vmatprep.subr.bf16.mxu1 %v4020_v12  ;;  %v4028_v17 = vld [vmem:[%s5724_s5 + $0x120] ss:$24 sps:$4 sm:$0xff]   ;;  %v4002_v20 = vld [vmem:[#allocation2 + $0x4] ss:$8 sps:$4 sm:$0xff]  }
  0x42   : > { %806 = vmatprep.subr.bf16.mxu0 %v3987_v4  ;;  %s4768_s27 = scalar_lea.vmem %s5765_s26, %s3861_s20  ;;  %v4026_v16 = vld [vmem:[%s5724_s5 + $0x124] ss:$24 sps:$4 sm:$0xff]   ;;  %1492 = vmatpush1.bf16.msra.mxu1 %v4022_v13  ;;  %v4001_v18 = vld [vmem:[#allocation2 + $0x10] ss:$8 sps:$4 sm:$0xff]   ;;  %v4032_v19 = vld [vmem:[%s5724_s5 + $0xf4] ss:$24 sps:$4 sm:$0xff]  }
  0x43   : > { %v4019_v11 = vld [vmem:[%s4768_s27 + $0x4] ss:$8 sps:$4 sm:$0xff]   ;;  %1493 = vmatprep.subr.bf16.mxu1 %v4026_v16  ;;  %v4034_v21 = vld [vmem:[%s5724_s5 + $0xf0] ss:$24 sps:$4 sm:$0xff]   ;;  %v4005_v24 = vld [vmem:[#allocation2 + $0xb4] ss:$8 sps:$4 sm:$0xff]  }
  0x44   : > { %3583 = vmatprep.mubr.msk.bf16.mxu0 %vm798_vm0, %v4019_v11  ;;  %v4038_v22 = vld [vmem:[%s5724_s5 + $0xc4] ss:$24 sps:$4 sm:$0xff]   ;;  %v4004_v23 = vld [vmem:[#allocation2] ss:$8 sps:$4 sm:$0xff]   ;;  %v4044_v26 = vld [vmem:[%s5724_s5 + $0x94] ss:$24 sps:$4 sm:$0xff]  }
  0x45   : > { %807 = vmatpush1.bf16.msra.mxu0 %v3989_v5  ;;  %v4040_v25 = vld [vmem:[%s5724_s5 + $0xc0] ss:$24 sps:$4 sm:$0xff]   ;;  %v4008_v28 = vld [vmem:[#allocation2 + $0xa4] ss:$8 sps:$4 sm:$0xff]   ;;  %v4046_v29 = vld [vmem:[%s5724_s5 + $0x90] ss:$24 sps:$4 sm:$0xff]  }
  0x46   : > { %808 = vmatprep.subr.bf16.mxu0 %v3990_v6  ;;  %1494 = vmatpush1.bf16.msra.mxu1 %v4028_v17  ;;  %v4007_v27 = vld [vmem:[#allocation2 + $0xb0] ss:$8 sps:$4 sm:$0xff]   ;;  %v4050_v30 = vld [vmem:[%s5724_s5 + $0x64] ss:$24 sps:$4 sm:$0xff]   ;;  %v4010_v31 = vld [vmem:[#allocation2 + $0xa0] ss:$8 sps:$4 sm:$0xff]  }
  0x47   : > { %1495 = vmatprep.subr.bf16.mxu1 %v4032_v19  ;;  %v4011_v32 = vld [vmem:[#allocation2 + $0x94] ss:$8 sps:$4 sm:$0xff]   ;;  %v4052_v33 = vld [vmem:[%s5724_s5 + $0x60] ss:$24 sps:$4 sm:$0xff]   ;;  %v4014_v36 = vld [vmem:[#allocation2 + $0x84] ss:$8 sps:$4 sm:$0xff]  }
  0x48   : > { %v4056_v34 = vld [vmem:[%s5724_s5 + $0x34] ss:$24 sps:$4 sm:$0xff]   ;;  %v4013_v35 = vld [vmem:[#allocation2 + $0x90] ss:$8 sps:$4 sm:$0xff]   ;;  %v4062_v38 = vld [vmem:[%s5724_s5 + $0x4] ss:$24 sps:$4 sm:$0xff]  }
  0x49   : > { %809 = vmatpush1.bf16.msra.mxu0 %v3992_v7  ;;  %v4058_v37 = vld [vmem:[%s5724_s5 + $0x30] ss:$24 sps:$4 sm:$0xff]   ;;  %v4025_v40 = vld [vmem:[%s5724_s5 + $0x15c] ss:$24 sps:$4 sm:$0xff]   ;;  %v4064_v41 = vld [vmem:[%s5724_s5] ss:$24 sps:$4 sm:$0xff]  }
  0x4a   : > { %810 = vmatprep.subr.bf16.mxu0 %v3993_v8  ;;  %1496 = vmatpush1.bf16.msra.mxu1 %v4034_v21  ;;  %v4016_v39 = vld [vmem:[#allocation2 + $0x80] ss:$8 sps:$4 sm:$0xff]   ;;  %v4068_v43 = vld [vmem:[%s5724_s5 + $0x2d4] ss:$24 sps:$4 sm:$0xff]   ;;  %v4023_v44 = vld [vmem:[%s5724_s5 + $0x158] ss:$24 sps:$4 sm:$0xff]  }
  0x4b   : > { %1497 = vmatprep.subr.bf16.mxu1 %v4038_v22  ;;  %v4017_v42 = vld [vmem:[%s4768_s27] ss:$8 sps:$4 sm:$0xff]   ;;  %v4031_v45 = vld [vmem:[%s5724_s5 + $0x12c] ss:$24 sps:$4 sm:$0xff]   ;;  %v4037_v49 = vld [vmem:[%s5724_s5 + $0xfc] ss:$24 sps:$4 sm:$0xff]  }
  0x4c   : > { %v4029_v46 = vld [vmem:[%s5724_s5 + $0x128] ss:$24 sps:$4 sm:$0xff]   ;;  %v4074_v48 = vld [vmem:[%s5724_s5 + $0x2a4] ss:$24 sps:$4 sm:$0xff]   ;;  %v4080_v51 = vld [vmem:[%s5724_s5 + $0x274] ss:$24 sps:$4 sm:$0xff]  }
  0x4d   : > { %811 = vmatpush1.bf16.msra.mxu0 %v3995_v9  ;;  %v4070_v47 = vld [vmem:[%s5724_s5 + $0x2d0] ss:$24 sps:$4 sm:$0xff]   ;;  %v4076_v50 = vld [vmem:[%s5724_s5 + $0x2a0] ss:$24 sps:$4 sm:$0xff]   ;;  %v4043_v53 = vld [vmem:[%s5724_s5 + $0xcc] ss:$24 sps:$4 sm:$0xff]  }
  0x4e   : > { %812 = vmatprep.subr.bf16.mxu0 %v3996_v10  ;;  %1498 = vmatpush1.bf16.msra.mxu1 %v4040_v25  ;;  %v4035_v52 = vld [vmem:[%s5724_s5 + $0xf8] ss:$24 sps:$4 sm:$0xff]   ;;  %v4086_v55 = vld [vmem:[%s5724_s5 + $0x244] ss:$24 sps:$4 sm:$0xff]   ;;  %v4041_v56 = vld [vmem:[%s5724_s5 + $0xc8] ss:$24 sps:$4 sm:$0xff]  }
  0x4f   : > { %1499 = vmatprep.subr.bf16.mxu1 %v4044_v26  ;;  %v4082_v54 = vld [vmem:[%s5724_s5 + $0x270] ss:$24 sps:$4 sm:$0xff]   ;;  %v4049_v57 = vld [vmem:[%s5724_s5 + $0x9c] ss:$24 sps:$4 sm:$0xff]   ;;  %v4088_v58 = vld [vmem:[%s5724_s5 + $0x240] ss:$24 sps:$4 sm:$0xff]  }
  0x50   : > { %v4047_v59 = vld [vmem:[%s5724_s5 + $0x98] ss:$24 sps:$4 sm:$0xff]   ;;  %v4055_v60 = vld [vmem:[%s5724_s5 + $0x6c] ss:$24 sps:$4 sm:$0xff]   ;;  %v4053_v61 = vld [vmem:[%s5724_s5 + $0x68] ss:$24 sps:$4 sm:$0xff]  }
  0x51   : > { %813 = vmatpush1.bf16.msra.mxu0 %v3998_v14  ;;  %v4061_v62 = vld [vmem:[%s5724_s5 + $0x3c] ss:$24 sps:$4 sm:$0xff]   ;;  %v4059_v63 = vld [vmem:[%s5724_s5 + $0x38] ss:$24 sps:$4 sm:$0xff]   ;;  %v4067_v0 = vld [vmem:[%s5724_s5 + $0xc] ss:$24 sps:$4 sm:$0xff]  }
  0x52   : > { %814 = vmatprep.subr.bf16.mxu0 %v3999_v15  ;;  %1500 = vmatpush1.bf16.msra.mxu1 %v4046_v29  ;;  %v4065_v1 = vld [vmem:[%s5724_s5 + $0x8] ss:$24 sps:$4 sm:$0xff]   ;;  %v4073_v2 = vld [vmem:[%s5724_s5 + $0x2dc] ss:$24 sps:$4 sm:$0xff]   ;;  %v4071_v3 = vld [vmem:[%s5724_s5 + $0x2d8] ss:$24 sps:$4 sm:$0xff]  }
  0x53   : > { %1501 = vmatprep.subr.bf16.mxu1 %v4050_v30  ;;  %v4079_v4 = vld [vmem:[%s5724_s5 + $0x2ac] ss:$24 sps:$4 sm:$0xff]   ;;  %v4077_v5 = vld [vmem:[%s5724_s5 + $0x2a8] ss:$24 sps:$4 sm:$0xff]   ;;  %v4085_v6 = vld [vmem:[%s5724_s5 + $0x27c] ss:$24 sps:$4 sm:$0xff]  }
  0x54   : > { %v4083_v7 = vld [vmem:[%s5724_s5 + $0x278] ss:$24 sps:$4 sm:$0xff]   ;;  %v4091_v8 = vld [vmem:[%s5724_s5 + $0x24c] ss:$24 sps:$4 sm:$0xff]   ;;  %v4089_v9 = vld [vmem:[%s5724_s5 + $0x248] ss:$24 sps:$4 sm:$0xff]  }
  0x55   : > { %815 = vmatpush1.bf16.msra.mxu0 %v4001_v18  ;;  %v4092_v10 = vld [vmem:[%s5724_s5 + $0x214] ss:$24 sps:$4 sm:$0xff]   ;;  %v4094_v11 = vld [vmem:[%s5724_s5 + $0x210] ss:$24 sps:$4 sm:$0xff]   ;;  %v4098_v14 = vld [vmem:[%s5724_s5 + $0x1e4] ss:$24 sps:$4 sm:$0xff]  }
  0x56   : > { %816 = vmatprep.subr.bf16.mxu0 %v4002_v20  ;;  %1502 = vmatpush1.bf16.msra.mxu1 %v4052_v33  ;;  %v4097_v12 = vld [vmem:[%s5724_s5 + $0x21c] ss:$24 sps:$4 sm:$0xff]   ;;  %v4095_v13 = vld [vmem:[%s5724_s5 + $0x218] ss:$24 sps:$4 sm:$0xff]   ;;  %v4103_v16 = vld [vmem:[%s5724_s5 + $0x1ec] ss:$24 sps:$4 sm:$0xff]  }
  0x57   : > { %1503 = vmatprep.subr.bf16.mxu1 %v4056_v34  ;;  %v4100_v15 = vld [vmem:[%s5724_s5 + $0x1e0] ss:$24 sps:$4 sm:$0xff]   ;;  %v4104_v18 = vld [vmem:[%s5724_s5 + $0x1b4] ss:$24 sps:$4 sm:$0xff]   ;;  %v4106_v19 = vld [vmem:[%s5724_s5 + $0x1b0] ss:$24 sps:$4 sm:$0xff]  }
  0x58   : > { %v4101_v17 = vld [vmem:[%s5724_s5 + $0x1e8] ss:$24 sps:$4 sm:$0xff]   ;;  %v4109_v20 = vld [vmem:[%s5724_s5 + $0x1bc] ss:$24 sps:$4 sm:$0xff]   ;;  %v4107_v21 = vld [vmem:[%s5724_s5 + $0x1b8] ss:$24 sps:$4 sm:$0xff]  }
  0x59   : > { %817 = vmatpush1.bf16.msra.mxu0 %v4004_v23  ;;  %v4110_v22 = vld [vmem:[%s5724_s5 + $0x184] ss:$24 sps:$4 sm:$0xff]   ;;  %v4112_v23 = vld [vmem:[%s5724_s5 + $0x180] ss:$24 sps:$4 sm:$0xff]   ;;  %s5767_s0 = sld [smem:[#allocation20_spill]]  ;;  %vm4571_vm1 = vmmov 0  }
  0x5a   : > { %826 = vmatprep.subr.bf16.mxu0 %v4005_v24  ;;  %1504 = vmatpush1.bf16.msra.mxu1 %v4058_v37  ;;  %v4115_v24 = vld [vmem:[%s5724_s5 + $0x18c] ss:$24 sps:$4 sm:$0xff]   ;;  %v4113_v25 = vld [vmem:[%s5724_s5 + $0x188] ss:$24 sps:$4 sm:$0xff]   ;;  %vm1666_vm2 = vcmask 130048  }
  0x5b   : > { %1505 = vmatprep.subr.bf16.mxu1 %v4062_v38  ;;  %v4118_v26 = vld [vmem:[%s5724_s5 + $0x164] ss:$24 sps:$4 sm:$0xff]   ;;  %v657_v30 = vld [vmem:[%s5766_s28] sm:$0x3]  ;;  %s623_s28 = sand.u32 1, %s4556_s30  }
  0x5c   : > { %s624_s20 = scalar_lea.vmem [#allocation7], %s623_s28  ;;  %s3458_s29 = scalar_lea.sflag [#allocation4], %s623_s28 }
  0x5d   : > { %827 = vmatpush2.bf16.msra.mxu0 %v4007_v27  ;;  %v659_v27 = vlaneseq  ;;  %s3470_s21 = sshll.u32 %s624_s20, 4  ;;  %s3471_s21 = int_to_ptr.vmem [resolvable:$true] %s3470_s21 }
  0x5e   : > { %828 = vmatprep.subr.bf16.mxu0 %v4008_v28  ;;  %1506 = vmatpush1.bf16.msra.mxu1 %v4064_v41  ;;  %s4496_s22 = scalar_lea.vmem %s3471_s21, 16 }
  0x5f   : > { %1507 = vmatprep.subr.bf16.mxu1 %v4068_v43  ;;  %v4967_v28 = vshrl.u32 %v659_v27, 7  ;;  %v849_v37 = vld [vmem:[%s5767_s0] sm:$0x3]  ;;  %v4163_v27 = vld [vmem:[%s5724_s5 + $0x194] ss:$24 sps:$4 sm:$0xff]   ;;  %s3858_s0 = sshll.u32 %s4695_s1, 4  ;;  %p4497_p10 = scmp.ne.s32.totalorder %s3471_s21, %s4496_s22 }
  0x60   : > { %s5684_s26 = scalar_lea.hbm %s5738_s19, %s3858_s0  ;;  %s4573_s1 = smov [#allocation7]  }
  0x61   : > { %829 = vmatpush2.bf16.msra.mxu0 %v4010_v31  ;;  %v4970_v29 = vsub.s32 0, %v4967_v28  ;;  %v4976_v31 = vsub.s32 1, %v4967_v28  ;;  %p4498_p12 = pnand %p4497_p10, %p4712_p5  ;;  %s4500_s24 = sshll.u32 %s4573_s1, 4  ;;  %s4501_s24 = int_to_ptr.vmem [resolvable:$false] %s4500_s24 }
  0x62   : > { %830 = vmatprep.subr.bf16.mxu0 %v4011_v32  ;;  %1508 = vmatpush2.bf16.msra.mxu1 %v4070_v47  ;;  %s4502_s23 = scalar_lea.vmem %s4501_s24, 32  ;;  %p4503_p11 = scmp.lt.s32.totalorder %s3471_s21, %s4501_s24 }
  0x63   : > { %1509 = vmatprep.subr.bf16.mxu1 %v4074_v48  ;;  %v662_v32 = vrot.slane %v657_v30, %v4970_v29  ;;  %v666_v33 = vrot.slane %v657_v30, %v4976_v31  ;;  %v858_v41 = vrot.slane %v849_v37, %v4976_v31  ;;  %v4161_v30 = vld [vmem:[%s5724_s5 + $0x190] ss:$24 sps:$4 sm:$0xff]   ;;  %p4499_p8 = pneg %p4498_p12  ;;  %p4504_p0 = scmp.lt.s32.totalorder %s4502_s23, %s4496_s22 }
  0x65   : > { %831 = vmatpush2.bf16.msra.mxu0 %v4013_v35  ;;  %p4505_p1 = por %p4504_p0, %p4503_p11 }
  0x66   : > { %832 = vmatprep.subr.bf16.mxu0 %v4014_v36  ;;  %1510 = vmatpush2.bf16.msra.mxu1 %v4076_v50 }
  0x67   : > { %1511 = vmatprep.subr.bf16.mxu1 %v4080_v51  ;;  %p4506_p3 = pnand %p4505_p1, %p4499_p8 }
  0x69   : > { %833 = vmatpush2.bf16.msra.mxu0 %v4016_v39 }
  0x6a   : > { %1534 = vmatprep.subr.bf16.mxu0 %v4025_v40  ;;  %1512 = vmatpush2.bf16.msra.mxu1 %v4082_v54 }
  0x6b   : > { %1513 = vmatprep.subr.bf16.mxu1 %v4086_v55 }
  0x6c   : > { %835 = vmatmul.mubr.bf16.vlgmr.msra.gmra.mxu0 %v4017_v42 }
  0x6d   : > { %1535 = vmatpush1.bf16.msra.mxu0 %v4023_v44  ;;  %v854_v44 = vrot.slane %v849_v37, %v4970_v29 }
  0x6e   : > { %1536 = vmatprep.subr.bf16.mxu0 %v4031_v45  ;;  %1514 = vmatpush2.bf16.msra.mxu1 %v4088_v58 }
  0x6f   : > { %1515 = vmatprep.subr.bf16.mxu1 %v4092_v10  ;;  %v4134_v10 = vld [vmem:[%s5724_s5 + $0x40] ss:$24 sps:$4 sm:$0xff]  }
  0x71   : > { %1537 = vmatpush1.bf16.msra.mxu0 %v4029_v46  ;;  %v865_v46 = vld [vmem:[%s5723_s4] sm:$0x3] }
  0x72   : > { %1538 = vmatprep.subr.bf16.mxu0 %v4037_v49  ;;  %1516 = vmatpush2.bf16.msra.mxu1 %v4094_v11  ;;  %v874_v50 = vrot.slane %v865_v46, %v4976_v31  ;;  %v870_v54 = vrot.slane %v865_v46, %v4970_v29  ;;  %v4139_v11 = vld [vmem:[%s5724_s5 + $0x14] ss:$24 sps:$4 sm:$0xff]  }
  0x73   : > { %1517 = vmatprep.subr.bf16.mxu1 %v4098_v14  ;;  %v4140_v14 = vld [vmem:[%s5724_s5 + $0x2e0] ss:$24 sps:$4 sm:$0xff]  }
  0x75   : > { %1539 = vmatpush1.bf16.msra.mxu0 %v4035_v52 }
  0x76   : > { %1540 = vmatprep.subr.bf16.mxu0 %v4043_v53  ;;  %1518 = vmatpush2.bf16.msra.mxu1 %v4100_v15  ;;  %v4145_v15 = vld [vmem:[%s5724_s5 + $0x2b4] ss:$24 sps:$4 sm:$0xff]  }
  0x77   : > { %1519 = vmatprep.subr.bf16.mxu1 %v4104_v18  ;;  %v4146_v18 = vld [vmem:[%s5724_s5 + $0x280] ss:$24 sps:$4 sm:$0xff]  }
  0x79   : > { %1541 = vmatpush1.bf16.msra.mxu0 %v4041_v56 }
  0x7a   : > { %1542 = vmatprep.subr.bf16.mxu0 %v4049_v57  ;;  %1520 = vmatpush2.bf16.msra.mxu1 %v4106_v19  ;;  %v4151_v19 = vld [vmem:[%s5724_s5 + $0x254] ss:$24 sps:$4 sm:$0xff]  }
  0x7b   : > { %1521 = vmatprep.subr.bf16.mxu1 %v4110_v22  ;;  %v4152_v22 = vld [vmem:[%s5724_s5 + $0x220] ss:$24 sps:$4 sm:$0xff]  }
  0x7d   : > { %1543 = vmatpush1.bf16.msra.mxu0 %v4047_v59 }
  0x7e   : > { %1544 = vmatprep.subr.bf16.mxu0 %v4055_v60  ;;  %1522 = vmatpush2.bf16.msra.mxu1 %v4112_v23  ;;  %v4157_v23 = vld [vmem:[%s5724_s5 + $0x1f4] ss:$24 sps:$4 sm:$0xff]  }
  0x7f   : > { %1577 = vmatprep.subr.bf16.mxu1 %v4118_v26  ;;  %v4158_v26 = vld [vmem:[%s5724_s5 + $0x1c0] ss:$24 sps:$4 sm:$0xff]  }
  0x81   : > { %1545 = vmatpush1.bf16.msra.mxu0 %v4053_v61  ;;  %v4116_v61 = vld [vmem:[%s5724_s5 + $0x160] ss:$24 sps:$4 sm:$0xff]  }
  0x82   : > { %1546 = vmatprep.subr.bf16.mxu0 %v4061_v62 }
  0x85   : > { %1547 = vmatpush1.bf16.msra.mxu0 %v4059_v63  ;;  %v4121_v63 = vld [vmem:[%s5724_s5 + $0x134] ss:$24 sps:$4 sm:$0xff]  }
  0x86   : > { %1548 = vmatprep.subr.bf16.mxu0 %v4067_v0  ;;  %v4119_v0 = vld [vmem:[%s5724_s5 + $0x130] ss:$24 sps:$4 sm:$0xff]  }
  0x89   : > { %1549 = vmatpush1.bf16.msra.mxu0 %v4065_v1  ;;  %v4124_v1 = vld [vmem:[%s5724_s5 + $0x104] ss:$24 sps:$4 sm:$0xff]  }
  0x8a   : > { %1550 = vmatprep.subr.bf16.mxu0 %v4073_v2  ;;  %v4122_v2 = vld [vmem:[%s5724_s5 + $0x100] ss:$24 sps:$4 sm:$0xff]  }
  0x8d   : > { %1551 = vmatpush2.bf16.msra.mxu0 %v4071_v3  ;;  %v4127_v3 = vld [vmem:[%s5724_s5 + $0xd4] ss:$24 sps:$4 sm:$0xff]  }
  0x8e   : > { %1552 = vmatprep.subr.bf16.mxu0 %v4079_v4  ;;  %v4125_v4 = vld [vmem:[%s5724_s5 + $0xd0] ss:$24 sps:$4 sm:$0xff]  }
  0x91   : > { %1553 = vmatpush2.bf16.msra.mxu0 %v4077_v5  ;;  %v4130_v5 = vld [vmem:[%s5724_s5 + $0xa4] ss:$24 sps:$4 sm:$0xff]  }
  0x92   : > { %1554 = vmatprep.subr.bf16.mxu0 %v4085_v6  ;;  %v4128_v6 = vld [vmem:[%s5724_s5 + $0xa0] ss:$24 sps:$4 sm:$0xff]  }
  0x95   : > { %1555 = vmatpush2.bf16.msra.mxu0 %v4083_v7  ;;  %v4133_v7 = vld [vmem:[%s5724_s5 + $0x74] ss:$24 sps:$4 sm:$0xff]  }
  0x96   : > { %1556 = vmatprep.subr.bf16.mxu0 %v4091_v8  ;;  %v4131_v8 = vld [vmem:[%s5724_s5 + $0x70] ss:$24 sps:$4 sm:$0xff]  }
  0x99   : > { %1557 = vmatpush2.bf16.msra.mxu0 %v4089_v9  ;;  %v4136_v9 = vld [vmem:[%s5724_s5 + $0x44] ss:$24 sps:$4 sm:$0xff]  }
  0x9a   : > { %1558 = vmatprep.subr.bf16.mxu0 %v4097_v12  ;;  %v4137_v12 = vld [vmem:[%s5724_s5 + $0x10] ss:$24 sps:$4 sm:$0xff]  }
  0x9d   : > { %1559 = vmatpush2.bf16.msra.mxu0 %v4095_v13  ;;  %v4142_v13 = vld [vmem:[%s5724_s5 + $0x2e4] ss:$24 sps:$4 sm:$0xff]  }
  0x9e   : > { %1560 = vmatprep.subr.bf16.mxu0 %v4103_v16  ;;  %v4143_v16 = vld [vmem:[%s5724_s5 + $0x2b0] ss:$24 sps:$4 sm:$0xff]  }
  0xa1   : > { %1561 = vmatpush2.bf16.msra.mxu0 %v4101_v17  ;;  %v4148_v17 = vld [vmem:[%s5724_s5 + $0x284] ss:$24 sps:$4 sm:$0xff]  }
  0xa2   : > { %1562 = vmatprep.subr.bf16.mxu0 %v4109_v20  ;;  %v4149_v20 = vld [vmem:[%s5724_s5 + $0x250] ss:$24 sps:$4 sm:$0xff]  }
  0xa5   : > { %1563 = vmatpush2.bf16.msra.mxu0 %v4107_v21  ;;  %v4154_v21 = vld [vmem:[%s5724_s5 + $0x224] ss:$24 sps:$4 sm:$0xff]  }
  0xa6   : > { %1564 = vmatprep.subr.bf16.mxu0 %v4115_v24  ;;  %v4155_v24 = vld [vmem:[%s5724_s5 + $0x1f0] ss:$24 sps:$4 sm:$0xff]  }
  0xa9   : > { %1565 = vmatpush2.bf16.msra.mxu0 %v4113_v25  ;;  %v4160_v25 = vld [vmem:[%s5724_s5 + $0x1c4] ss:$24 sps:$4 sm:$0xff]  }
 0x12c   : > { %v836_v34 = vpop.f32.mrf.mxu0 }
 0x12d   : > { %v837_v35 = vadd.f32 %v836_v34, %v662_v32  ;;  %v5110_v34 = vld [vmem:[%s5725_s6] sm:$0x3f] }
 0x12e   : > { %v838_v36 = vpop.f32.mrf.mxu0 }
 0x12f   : > { %v839_v38 = vadd.f32 %v838_v36, %v666_v33  ;;  %v845_v43 = vmax.f32 %v837_v35, 0.0  ;;  %v995_v35 = vsub.s32 3, %v4967_v28 }
 0x130   : > { %v840_v39 = vpop.f32.mrf.mxu0 }
 0x131   : > { %v846_v40 = vmax.f32 %v839_v38, 0.0  ;;  %v841_v42 = vadd.f32 %v840_v39, %v662_v32  ;;  %v861_v53 = vmul.f32 %v854_v44, %v845_v43  ;;  %v4570_v32 = vmov 0.0  }
 0x132   : > { %v842_v45 = vpop.f32.mrf.mxu0  ;;  %3904 = vmatprep.subr.bf16.mxu0 %v4570_v32 }
 0x133   : > { %v847_v47 = vmax.f32 %v841_v42, 0.0  ;;  %v843_v48 = vadd.f32 %v842_v45, %v666_v33  ;;  %v862_v49 = vmul.f32 %v858_v41, %v846_v40  ;;  %v4996_v59 = vadd.f32 %v870_v54, %v861_v53 }
 0x134   : > { %v991_v33 = vsub.s32 2, %v4967_v28  ;;  %v984_v42 = vrot.slane %v5110_v34, %v4970_v29 }
 0x135   : > { %v863_v51 = vmul.f32 %v854_v44, %v847_v47  ;;  %v848_v52 = vmax.f32 %v843_v48, 0.0  ;;  %v4992_v57 = vadd.f32 %v874_v50, %v862_v49  ;;  %v988_v47 = vrot.slane %v5110_v34, %v4976_v31 }
 0x136   : > { %v992_v38 = vrot.slane %v5110_v34, %v991_v33 }
 0x137   : > { %v864_v55 = vmul.f32 %v858_v41, %v848_v52  ;;  %v4990_v56 = vadd.f32 %v870_v54, %v863_v51  ;;  %v996_v41 = vrot.slane %v5110_v34, %v995_v35 }
 0x139   : > { %v4994_v58 = vadd.f32 %v874_v50, %v864_v55  ;;  %v5005_v62 = vpack.c.bf16 %v4990_v56, %v4996_v59 }
 0x13b   : > { %v882_v60 = vpack.c.bf16 %v4994_v58, %v4992_v57 }
 0x13d   : > { %1523 = vmatprep.mubr.bf16.mxu1 %v882_v60  ;;  %1566 = vmatprep.mubr.bf16.mxu0 %v882_v60 }
 0x13e   : > { %1524 = vmatmul.mubr.bf16.vlgmr.msra.gmra.mxu1 %v5005_v62  ;;  %1567 = vmatmul.mubr.bf16.vlgmr.msra.gmra.mxu0 %v5005_v62 }
 0x13f   : > { %1578 = vmatpush1.bf16.msra.mxu1 %v4116_v61  ;;  %1609 = vmatprep.mubr.bf16.mxu1 %v882_v60 }
 0x140   : > { %1579 = vmatprep.subr.bf16.mxu1 %v4121_v63  ;;  %3906 = vmatprep.mubr.msk.bf16.mxu0 %vm4571_vm1, %v4570_v32 }
 0x143   : > { %1580 = vmatpush1.bf16.msra.mxu1 %v4119_v0 }
 0x144   : > { %1581 = vmatprep.subr.bf16.mxu1 %v4124_v1 }
 0x147   : > { %1582 = vmatpush1.bf16.msra.mxu1 %v4122_v2 }
 0x148   : > { %1583 = vmatprep.subr.bf16.mxu1 %v4127_v3 }
 0x14b   : > { %1584 = vmatpush1.bf16.msra.mxu1 %v4125_v4  ;;  %v999_v4 = vsub.s32 4, %v4967_v28 }
 0x14c   : > { %1585 = vmatprep.subr.bf16.mxu1 %v4130_v5 }
 0x14f   : > { %1586 = vmatpush1.bf16.msra.mxu1 %v4128_v6  ;;  %v1000_v6 = vrot.slane %v5110_v34, %v999_v4 }
 0x150   : > { %1587 = vmatprep.subr.bf16.mxu1 %v4133_v7 }
 0x153   : > { %1588 = vmatpush1.bf16.msra.mxu1 %v4131_v8 }
 0x154   : > { %1589 = vmatprep.subr.bf16.mxu1 %v4136_v9 }
 0x157   : > { %1590 = vmatpush1.bf16.msra.mxu1 %v4134_v10 }
 0x158   : > { %1591 = vmatprep.subr.bf16.mxu1 %v4139_v11 }
 0x15b   : > { %1592 = vmatpush1.bf16.msra.mxu1 %v4137_v12 }
 0x15c   : > { %1593 = vmatprep.subr.bf16.mxu1 %v4142_v13 }
 0x15f   : > { %1594 = vmatpush2.bf16.msra.mxu1 %v4140_v14 }
 0x160   : > { %1595 = vmatprep.subr.bf16.mxu1 %v4145_v15 }
 0x163   : > { %1596 = vmatpush2.bf16.msra.mxu1 %v4143_v16 }
 0x164   : > { %1597 = vmatprep.subr.bf16.mxu1 %v4148_v17 }
 0x167   : > { %1598 = vmatpush2.bf16.msra.mxu1 %v4146_v18 }
 0x168   : > { %1599 = vmatprep.subr.bf16.mxu1 %v4151_v19 }
 0x16b   : > { %1600 = vmatpush2.bf16.msra.mxu1 %v4149_v20 }
 0x16c   : > { %1601 = vmatprep.subr.bf16.mxu1 %v4154_v21 }
 0x16f   : > { %1602 = vmatpush2.bf16.msra.mxu1 %v4152_v22 }
 0x170   : > { %1603 = vmatprep.subr.bf16.mxu1 %v4157_v23 }
 0x173   : > { %1604 = vmatpush2.bf16.msra.mxu1 %v4155_v24 }
 0x174   : > { %1605 = vmatprep.subr.bf16.mxu1 %v4160_v25 }
 0x177   : > { %1606 = vmatpush2.bf16.msra.mxu1 %v4158_v26 }
 0x178   : > { %1607 = vmatprep.subr.bf16.mxu1 %v4163_v27 }
 0x17b   : > { %1608 = vmatpush2.bf16.msra.mxu1 %v4161_v30 }
 0x17c   : > { %3892 = vmatprep.subr.bf16.mxu1 %v4570_v32 }
 0x17e   : > { %1610 = vmatmul.mubr.bf16.vlgmr.msra.gmra.mxu1 %v5005_v62 }
 0x17f   : > { %3894 = vmatprep.mubr.msk.bf16.mxu1 %vm4571_vm1, %v4570_v32 }
 0x1fe   : > { %v1525_v36 = vpop.f32.mrf.mxu1  ;;  %v1568_v37 = vpop.f32.mrf.mxu0 }
 0x1ff   : > { %v1569_v45 = vadd.f32 %v1568_v37, %v992_v38  ;;  %v1526_v54 = vadd.f32 %v1525_v36, %v984_v42 }
 0x200   : > { %v1527_v39 = vpop.f32.mrf.mxu1  ;;  %v1570_v40 = vpop.f32.mrf.mxu0 }
 0x201   : > { %v1571_v51 = vadd.f32 %v1570_v40, %v996_v41  ;;  %v1528_v61 = vadd.f32 %v1527_v39, %v988_v47  ;;  %v1620_v63 = vmul.f32 0.088388346, %v1526_v54  ;;  %v4176_v54 = vld [vmem:[#allocation5 + $0xe0] ss:$8 sps:$4 sm:$0xff]  }
 0x202   : > { %v1529_v43 = vpop.f32.mrf.mxu1  ;;  %v1572_v44 = vpop.f32.mrf.mxu0 }
 0x203   : > { %v1573_v46 = vadd.f32 %v1572_v44, %v992_v38  ;;  %v1530_v48 = vadd.f32 %v1529_v43, %v984_v42  ;;  %v1751_v1 = vmul.f32 0.088388346, %v1528_v61  ;;  %v4184_v61 = vld [vmem:[#allocation5 + $0xd4] ss:$8 sps:$4 sm:$0xff]  }
 0x204   : > { %v1531_v49 = vpop.f32.mrf.mxu1  ;;  %v1574_v50 = vpop.f32.mrf.mxu0 }
 0x205   : > { %v1623_v52 = vpack.c.bf16 %v1573_v46, %v1569_v45  ;;  %v1575_v53 = vadd.f32 %v1574_v50, %v996_v41  ;;  %v1532_v55 = vadd.f32 %v1531_v49, %v988_v47  ;;  %v1621_v62 = vmul.f32 0.088388346, %v1530_v48 }
 0x207   : > { %v1754_v60 = vpack.c.bf16 %v1575_v53, %v1571_v51  ;;  %3893 = vmatpush3.bf16.xpose.msra.mxu1 %v1623_v52  ;;  %v1752_v0 = vmul.f32 0.088388346, %v1532_v55  ;;  %v1622_v2 = vpack.c.bf16 %v1621_v62, %v1620_v63  ;;  %v4170_v52 = vld [vmem:[#allocation5 + $0xf0] ss:$8 sps:$4 sm:$0xff]   ;;  %v4172_v53 = vld [vmem:[#allocation5 + $0xf4] ss:$8 sps:$4 sm:$0xff]  }
 0x208   : > { %3898 = vmatprep.subr.bf16.mxu1 %v4570_v32  ;;  %v4178_v55 = vld [vmem:[#allocation5 + $0xe4] ss:$8 sps:$4 sm:$0xff]   ;;  %v4188_v62 = vld [vmem:[#allocation5 + $0xc0] ss:$8 sps:$4 sm:$0xff]  }
 0x209   : > { %3905 = vmatpush3.bf16.xpose.msra.mxu0 %v1754_v60  ;;  %v1753_v3 = vpack.c.bf16 %v1752_v0, %v1751_v1  ;;  %v4182_v60 = vld [vmem:[#allocation5 + $0xd0] ss:$8 sps:$4 sm:$0xff]   ;;  %v4190_v63 = vld [vmem:[#allocation5 + $0xc4] ss:$8 sps:$4 sm:$0xff]   ;;  %v4196_v1 = vld [vmem:[#allocation5 + $0xb4] ss:$8 sps:$4 sm:$0xff]  }
 0x20a   : > { %1961 = vmatprep.subr.bf16.mxu0 %v4172_v53  ;;  %v4194_v0 = vld [vmem:[#allocation5 + $0xb0] ss:$8 sps:$4 sm:$0xff]  }
 0x20e   : > { %3895 = vmatmul.mubr.bf16.vlgmr.msra.gmra.mxu1 %v1622_v2 }
 0x20f   : > { %3900 = vmatprep.mubr.msk.bf16.mxu1 %vm4571_vm1, %v4570_v32 }
 0x210   : > { %3907 = vmatmul.mubr.bf16.vlgmr.msra.gmra.mxu0 %v1753_v3 }
 0x211   : > { %1962 = vmatpush1.bf16.msra.mxu0 %v4170_v52 }
 0x212   : > { %1963 = vmatprep.subr.bf16.mxu0 %v4178_v55 }
 0x215   : > { %1964 = vmatpush1.bf16.msra.mxu0 %v4176_v54 }
 0x216   : > { %1965 = vmatprep.subr.bf16.mxu0 %v4184_v61 }
 0x219   : > { %1966 = vmatpush1.bf16.msra.mxu0 %v4182_v60 }
 0x21a   : > { %1967 = vmatprep.subr.bf16.mxu0 %v4190_v63 }
 0x21d   : > { %1968 = vmatpush1.bf16.msra.mxu0 %v4188_v62 }
 0x21e   : > { %1969 = vmatprep.subr.bf16.mxu0 %v4196_v1 }
 0x221   : > { %1970 = vmatpush1.bf16.msra.mxu0 %v4194_v0  ;;  %v2127_v0 = vld [vmem:[%s5727_s8] sm:$0x3] }
 0x23e   : > { %v1611_v5 = vpop.f32.mrf.mxu1 }
 0x23f   : > { %v1612_v9 = vadd.f32 %v1611_v5, %v1000_v6 }
 0x240   : > { %v5128_v7 = vpop.f32.mrf.mxu1 }
 0x242   : > { %v1615_v8 = vpop.f32.mrf.mxu1 }
 0x243   : > { %v1616_v10 = vadd.f32 %v1615_v8, %v1000_v6  ;;  %v1003_v6 = vsub.s32 5, %v4967_v28 }
 0x244   : > { %v5131_v12 = vpop.f32.mrf.mxu1 }
 0x245   : > { %v1624_v11 = vpack.c.bf16 %v1616_v10, %v1612_v9  ;;  %v1004_v9 = vrot.slane %v5110_v34, %v1003_v6 }
 0x247   : > { %3899 = vmatpush3.bf16.msra.mxu1 %v1624_v11  ;;  %v1618_v11 = vadd.f32 %v5131_v12, %v1004_v9 }
 0x248   : > { %3910 = vmatprep.subr.bf16.mxu1 %v4570_v32 }
 0x2ce   : > { %v1659_v13 = vpop.f32.mrf.mxu1 }
 0x2cf   : > { %v1667_v14 = vsel %vm1666_vm2, %v1659_v13, -inf }
 0x2d0   : > { %v1790_v15 = vpop.f32.mrf.mxu0  ;;  %1668 = vmax.xlane.f32.xlu0 %v1667_v14  ;;  %v3896_v16 = vpop.f32.mrf.mxu1 }
 0x2d1   : > { %v1797_v17 = vsel %vm1666_vm2, %v1790_v15, -inf }
 0x2d2   : > { %1798 = vmax.xlane.f32.xlu1 %v1797_v17  ;;  %v1662_v18 = vpop.f32.mrf.mxu1  ;;  %v3908_v19 = vpop.f32.mrf.mxu0  ;;  %v4166_v17 = vld [vmem:[#allocation5 + $0x74] ss:$8 sps:$4 sm:$0xff]  }
 0x2d3   : > { %v1670_v20 = vsel %vm1666_vm2, %v1662_v18, -inf }
 0x2d4   : > { %v1793_v21 = vpop.f32.mrf.mxu0  ;;  %1671 = vmax.xlane.f32.xlu0 %v1670_v20  ;;  %v3897_v22 = vpop.f32.mrf.mxu1 }
 0x2d5   : > { %v1800_v23 = vsel %vm1666_vm2, %v1793_v21, -inf  ;;  %v4164_v22 = vld [vmem:[#allocation5 + $0x70] ss:$8 sps:$4 sm:$0xff]  }
 0x2d6   : > { %1801 = vmax.xlane.f32.xlu1 %v1800_v23  ;;  %v3909_v24 = vpop.f32.mrf.mxu0  ;;  %v4169_v23 = vld [vmem:[#allocation5 + $0x64] ss:$8 sps:$4 sm:$0xff]  }
 0x2d7   : > { %v4175_v24 = vld [vmem:[#allocation5 + $0x54] ss:$8 sps:$4 sm:$0xff]  }
 0x359   : > { %v1669_v25 = vpop.xlane.xlu0 %1668 }
 0x35a   : > { %v1673_v26 = vsub.f32 %v1659_v13, %v1669_v25  ;;  %v4173_v25 = vld [vmem:[#allocation5 + $0x50] ss:$8 sps:$4 sm:$0xff]  }
 0x35b   : > { %v1799_v27 = vpop.xlane.xlu1 %1798 }
 0x35c   : > { %v1675_v30 = vmul.f32 1.442695, %v1673_v26  ;;  %v1803_v36 = vsub.f32 %v1790_v15, %v1799_v27  ;;  %v1614_v15 = vadd.f32 %v5128_v7, %v1004_v9  ;;  %v4167_v7 = vld [vmem:[#allocation5 + $0x60] ss:$8 sps:$4 sm:$0xff]   ;;  %v4181_v26 = vld [vmem:[#allocation5 + $0x44] ss:$8 sps:$4 sm:$0xff]  }
 0x35d   : > { %v1672_v37 = vpop.xlane.xlu0 %1671  ;;  %v4179_v27 = vld [vmem:[#allocation5 + $0x40] ss:$8 sps:$4 sm:$0xff]  }
 0x35e   : > { %4420 = vpow2.f32 %v1675_v30  ;;  %v1805_v38 = vmul.f32 1.442695, %v1803_v36  ;;  %v1674_v39 = vsub.f32 %v1662_v18, %v1672_v37  ;;  %v1755_v19 = vpack.c.bf16 %v1618_v11, %v1614_v15  ;;  %v4185_v30 = vld [vmem:[#allocation5 + $0x30] ss:$8 sps:$4 sm:$0xff]   ;;  %v4193_v36 = vld [vmem:[#allocation5 + $0x24] ss:$8 sps:$4 sm:$0xff]  }
 0x35f   : > { %v1802_v40 = vpop.xlane.xlu1 %1801  ;;  %v4191_v37 = vld [vmem:[#allocation5 + $0x20] ss:$8 sps:$4 sm:$0xff]  }
 0x360   : > { %4422 = vpow2.f32 %v1805_v38  ;;  %v1677_v41 = vmul.f32 1.442695, %v1674_v39  ;;  %v1804_v42 = vsub.f32 %v1793_v21, %v1802_v40  ;;  %v4199_v38 = vld [vmem:[#allocation5 + $0x14] ss:$8 sps:$4 sm:$0xff]   ;;  %v4197_v39 = vld [vmem:[#allocation5 + $0x10] ss:$8 sps:$4 sm:$0xff]  }
 0x361   : > { %v4200_v40 = vld [vmem:[#allocation5 + $0xa0] ss:$8 sps:$4 sm:$0xff]  }
 0x362   : > { %4424 = vpow2.f32 %v1677_v41  ;;  %v1807_v43 = vmul.f32 1.442695, %v1804_v42  ;;  %v4202_v41 = vld [vmem:[#allocation5 + $0xa4] ss:$8 sps:$4 sm:$0xff]   ;;  %v4203_v42 = vld [vmem:[#allocation5] ss:$8 sps:$4 sm:$0xff]  }
 0x363   : > { %1971 = vmatprep.subr.bf16.mxu0 %v4202_v41  ;;  %v4238_v41 = vld [vmem:[%s5730_s11 + $0x64] ss:$16 sps:$4 sm:$0xff]  }
 0x364   : > { %4426 = vpow2.f32 %v1807_v43  ;;  %v4205_v43 = vld [vmem:[#allocation5 + $0x4] ss:$8 sps:$4 sm:$0xff]   ;;  %1972 = vmatpush1.bf16.msra.mxu0 %v4200_v40  ;;  %v4233_v40 = vld [vmem:[%s5730_s11 + $0x88] ss:$16 sps:$4 sm:$0xff]  }
 0x36b   : > { %v4421_v44 = vpop.eup %4420 }
 0x36c   : > { %v1679_v45 = vsel %vm1666_vm2, %v4421_v44, 0.0 }
 0x36d   : > { %v4423_v46 = vpop.eup %4422  ;;  %1680 = vadd.xlane.f32.xlu0 %v1679_v45  ;;  %v4208_v45 = vld [vmem:[#allocation5 + $0x94] ss:$8 sps:$4 sm:$0xff]  }
 0x36e   : > { %v1809_v48 = vsel %vm1666_vm2, %v4423_v46, 0.0  ;;  %1973 = vmatprep.subr.bf16.mxu0 %v4208_v45  ;;  %v4244_v45 = vld [vmem:[%s5730_s11 + $0x44] ss:$16 sps:$4 sm:$0xff]  }
 0x36f   : > { %v4425_v47 = vpop.eup %4424 }
 0x370   : > { %v1682_v49 = vsel %vm1666_vm2, %v4425_v47, 0.0 }
 0x371   : > { %v4427_v50 = vpop.eup %4426  ;;  %1810 = vadd.xlane.f32.xlu0 %v1809_v48  ;;  %1683 = vadd.xlane.f32.xlu1 %v1682_v49  ;;  %v4211_v48 = vld [vmem:[#allocation5 + $0x84] ss:$8 sps:$4 sm:$0xff]  }
 0x372   : > { %v1812_v51 = vsel %vm1666_vm2, %v4427_v50, 0.0 }
 0x375   : > { %1813 = vadd.xlane.f32.xlu1 %v1812_v51 }
 0x3f6   : > { %v1681_v2 = vpop.xlane.xlu0 %1680 }
 0x3f7   : > { %4428 = vrcp.f32 %v1681_v2  ;;  %v2132_v2 = vrot.slane %v2127_v0, %v4970_v29 }
 0x3fa   : > { %v1684_v3 = vpop.xlane.xlu1 %1683  ;;  %v1811_v4 = vpop.xlane.xlu0 %1810 }
 0x3fb   : > { %4430 = vrcp.f32 %v1684_v3 }
 0x3fe   : > { %v1814_v5 = vpop.xlane.xlu1 %1813 }
 0x3ff   : > { %4432 = vrcp.f32 %v1814_v5  ;;  %v2136_v5 = vrot.slane %v2127_v0, %v4976_v31  ;;  %v4263_v0 = vld [vmem:[%s5730_s11 + $0x1e8] ss:$16 sps:$4 sm:$0xff]  }
 0x400   : > { %4434 = vrcp.f32 %v1811_v4 }
 0x404   : > { %v4429_v8 = vpop.eup %4428 }
 0x405   : > { %v1686_v13 = vmul.f32 %v4429_v8, %v4421_v44  ;;  %v4206_v44 = vld [vmem:[#allocation5 + $0x90] ss:$8 sps:$4 sm:$0xff]  }
 0x406   : > { %1974 = vmatpush1.bf16.msra.mxu0 %v4206_v44  ;;  %v4239_v44 = vld [vmem:[%s5730_s11 + $0x68] ss:$16 sps:$4 sm:$0xff]  }
 0x407   : > { %1975 = vmatprep.subr.bf16.mxu0 %v4211_v48  ;;  %v4245_v48 = vld [vmem:[%s5730_s11 + $0x48] ss:$16 sps:$4 sm:$0xff]  }
 0x408   : > { %v4431_v10 = vpop.eup %4430 }
 0x409   : > { %v1688_v14 = vmul.f32 %v4431_v10, %v4425_v47  ;;  %v4209_v47 = vld [vmem:[#allocation5 + $0x80] ss:$8 sps:$4 sm:$0xff]  }
 0x40a   : > { %1976 = vmatpush1.bf16.msra.mxu0 %v4209_v47  ;;  %v4242_v47 = vld [vmem:[%s5730_s11 + $0x40] ss:$16 sps:$4 sm:$0xff]  }
 0x40b   : > { %v1689_v16 = vpack.c.bf16 %v1688_v14, %v1686_v13 }
 0x40c   : > { %v4433_v18 = vpop.eup %4432 }
 0x40d   : > { %3901 = vmatmul.mubr.msk.bf16.vlgmr.msra.gmra.mxu1 %vm1666_vm2, %v1689_v16  ;;  %v4435_v20 = vpop.eup %4434  ;;  %v1818_v21 = vmul.f32 %v4433_v18, %v4427_v50 }
 0x40e   : > { %3911 = vmatpush3.bf16.msra.mxu1 %v1755_v19  ;;  %3912 = vmatprep.mubr.msk.bf16.mxu1 %vm4571_vm1, %v4570_v32  ;;  %v1816_v34 = vmul.f32 %v4435_v20, %v4423_v46  ;;  %v4187_v32 = vld [vmem:[#allocation5 + $0x34] ss:$8 sps:$4 sm:$0xff]   ;;  %v4572_v46 = vmov 0  }
 0x40f   : > { %2084 = vmatprep.subr.bf16.mxu1 %v4166_v17  ;;  %1993 = vmatprep.mubr.bf16.mxu0 %v4572_v46 }
 0x410   : > { %v1819_v12 = vpack.c.bf16 %v1818_v21, %v1816_v34 }
 0x415   : > { %3913 = vmatmul.mubr.msk.bf16.vlgmr.msra.gmra.mxu1 %vm1666_vm2, %v1819_v12 }
 0x416   : > { %2085 = vmatpush1.bf16.msra.mxu1 %v4164_v22  ;;  %2116 = vmatprep.mubr.bf16.mxu1 %v4572_v46  ;;  %v4247_v46 = vld [vmem:[%s5730_s11 + $0x4c] ss:$16 sps:$4 sm:$0xff]  }
 0x417   : > { %2086 = vmatprep.subr.bf16.mxu1 %v4169_v23 }
 0x41a   : > { %2087 = vmatpush1.bf16.msra.mxu1 %v4167_v7  ;;  %v4220_v7 = vld [vmem:[%s5730_s11 + $0xc4] ss:$16 sps:$4 sm:$0xff]  }
 0x41b   : > { %2088 = vmatprep.subr.bf16.mxu1 %v4175_v24  ;;  %v4223_v24 = vld [vmem:[%s5730_s11 + $0xcc] ss:$16 sps:$4 sm:$0xff]  }
 0x41e   : > { %2089 = vmatpush1.bf16.msra.mxu1 %v4173_v25  ;;  %v4218_v25 = vld [vmem:[%s5730_s11 + $0xc0] ss:$16 sps:$4 sm:$0xff]  }
 0x41f   : > { %2090 = vmatprep.subr.bf16.mxu1 %v4181_v26  ;;  %v4221_v26 = vld [vmem:[%s5730_s11 + $0xc8] ss:$16 sps:$4 sm:$0xff]  }
 0x422   : > { %2091 = vmatpush1.bf16.msra.mxu1 %v4179_v27  ;;  %v4226_v27 = vld [vmem:[%s5730_s11 + $0xa4] ss:$16 sps:$4 sm:$0xff]  }
 0x423   : > { %2092 = vmatprep.subr.bf16.mxu1 %v4187_v32  ;;  %v4229_v32 = vld [vmem:[%s5730_s11 + $0xac] ss:$16 sps:$4 sm:$0xff]  }
 0x426   : > { %2093 = vmatpush1.bf16.msra.mxu1 %v4185_v30  ;;  %v4224_v30 = vld [vmem:[%s5730_s11 + $0xa0] ss:$16 sps:$4 sm:$0xff]  }
 0x427   : > { %2094 = vmatprep.subr.bf16.mxu1 %v4193_v36  ;;  %v4227_v36 = vld [vmem:[%s5730_s11 + $0xa8] ss:$16 sps:$4 sm:$0xff]  }
 0x42a   : > { %2095 = vmatpush1.bf16.msra.mxu1 %v4191_v37  ;;  %v4232_v37 = vld [vmem:[%s5730_s11 + $0x84] ss:$16 sps:$4 sm:$0xff]  }
 0x42b   : > { %2096 = vmatprep.subr.bf16.mxu1 %v4199_v38  ;;  %v4235_v38 = vld [vmem:[%s5730_s11 + $0x8c] ss:$16 sps:$4 sm:$0xff]  }
 0x42e   : > { %2097 = vmatpush1.bf16.msra.mxu1 %v4197_v39  ;;  %v4230_v39 = vld [vmem:[%s5730_s11 + $0x80] ss:$16 sps:$4 sm:$0xff]  }
 0x42f   : > { %2098 = vmatprep.subr.bf16.mxu1 %v4205_v43  ;;  %v4236_v43 = vld [vmem:[%s5730_s11 + $0x60] ss:$16 sps:$4 sm:$0xff]  }
 0x432   : > { %2099 = vmatpush1.bf16.msra.mxu1 %v4203_v42  ;;  %v4241_v42 = vld [vmem:[%s5730_s11 + $0x6c] ss:$16 sps:$4 sm:$0xff]  }
 0x4cd   : > { %v1727_v49 = vpop.f32.mrf.mxu1 }
 0x4cf   : > { %v3902_v50 = vpop.f32.mrf.mxu1 }
 0x4d0   : > { %v4253_v50 = vld [vmem:[%s5730_s11 + $0x2c] ss:$16 sps:$4 sm:$0xff]  }
 0x4d1   : > { %v1730_v51 = vpop.f32.mrf.mxu1 }
 0x4d2   : > { %v1734_v52 = vpack.c.bf16 %v1730_v51, %v1727_v49  ;;  %v4250_v49 = vld [vmem:[%s5730_s11 + $0x24] ss:$16 sps:$4 sm:$0xff]   ;;  %v4248_v51 = vld [vmem:[%s5730_s11 + $0x20] ss:$16 sps:$4 sm:$0xff]  }
 0x4d3   : > { %v3903_v53 = vpop.f32.mrf.mxu1 }
 0x4d4   : > { %2117 = vmatmul.mubr.bf16.vlgmr.msra.gmra.mxu1 %v1734_v52  ;;  %v4251_v52 = vld [vmem:[%s5730_s11 + $0x28] ss:$16 sps:$4 sm:$0xff]   ;;  %v4256_v53 = vld [vmem:[%s5730_s11 + $0x4] ss:$16 sps:$4 sm:$0xff]  }
 0x4d5   : > { %v1857_v54 = vpop.f32.mrf.mxu1 }
 0x4d7   : > { %v3914_v55 = vpop.f32.mrf.mxu1 }
 0x4d8   : > { %v4254_v55 = vld [vmem:[%s5730_s11] ss:$16 sps:$4 sm:$0xff]  }
 0x4d9   : > { %v1860_v60 = vpop.f32.mrf.mxu1 }
 0x4da   : > { %v1864_v61 = vpack.c.bf16 %v1860_v60, %v1857_v54  ;;  %v4259_v54 = vld [vmem:[%s5730_s11 + $0xc] ss:$16 sps:$4 sm:$0xff]   ;;  %v4257_v60 = vld [vmem:[%s5730_s11 + $0x8] ss:$16 sps:$4 sm:$0xff]  }
 0x4db   : > { %v3915_v62 = vpop.f32.mrf.mxu1 }
 0x4dc   : > { %1994 = vmatmul.mubr.bf16.vlgmr.msra.gmra.mxu0 %v1864_v61  ;;  %v4262_v61 = vld [vmem:[%s5730_s11 + $0x1e4] ss:$16 sps:$4 sm:$0xff]   ;;  %v4265_v62 = vld [vmem:[%s5730_s11 + $0x1ec] ss:$16 sps:$4 sm:$0xff]  }
 0x594   : > { %v2118_v63 = vpop.f32.mrf.mxu1 }
 0x596   : > { %v2120_v1 = vpop.f32.mrf.mxu1 }
 0x598   : > { %v2122_v6 = vpop.f32.mrf.mxu1 }
 0x59a   : > { %v2124_v15 = vpop.f32.mrf.mxu1 }
 0x59c   : > { %v1995_v3 = vpop.f32.mrf.mxu0 }
 0x59d   : > { %v2119_v4 = vadd.f32 %v2118_v63, %v1995_v3  ;;  %v4260_v63 = vld [vmem:[%s5730_s11 + $0x1e0] ss:$16 sps:$4 sm:$0xff]  }
 0x59e   : > { %v1997_v8 = vpop.f32.mrf.mxu0 }
 0x59f   : > { %v2139_v9 = vadd.f32 %v2132_v2, %v2119_v4  ;;  %v2121_v10 = vadd.f32 %v2120_v1, %v1997_v8 }
 0x5a0   : > { %v1999_v11 = vpop.f32.mrf.mxu0 }
 0x5a1   : > { %v2140_v13 = vadd.f32 %v2136_v5, %v2121_v10  ;;  %v2123_v14 = vadd.f32 %v2122_v6, %v1999_v11  ;;  %v5155_v19 = vadd.f32 %v2139_v9, %v4996_v59  ;;  %v4214_v59 = vld [vmem:[%s5730_s11 + $0xe4] ss:$16 sps:$4 sm:$0xff]  }
 0x5a2   : > { %v2001_v16 = vpop.f32.mrf.mxu0  ;;  %2620 = vmatprep.subr.bf16.mxu0 %v4214_v59  ;;  %v4281_v59 = vld [vmem:[%s5730_s11 + $0x188] ss:$16 sps:$4 sm:$0xff]  }
 0x5a3   : > { %v2141_v17 = vadd.f32 %v2132_v2, %v2123_v14  ;;  %v2125_v18 = vadd.f32 %v2124_v15, %v2001_v16  ;;  %v5158_v20 = vadd.f32 %v2140_v13, %v4992_v57  ;;  %v4212_v57 = vld [vmem:[%s5730_s11 + $0xe0] ss:$16 sps:$4 sm:$0xff]  }
 0x5a4   : > { %2621 = vmatpush1.bf16.msra.mxu0 %v4212_v57  ;;  %v4278_v57 = vld [vmem:[%s5730_s11 + $0x180] ss:$16 sps:$4 sm:$0xff]  }
 0x5a5   : > { %v2142_v21 = vadd.f32 %v2136_v5, %v2125_v18  ;;  %v2147_v34 = vadd.f32 %v5158_v20, %v5155_v19  ;;  %v5163_v22 = vadd.f32 %v2141_v17, %v4990_v56  ;;  %v4215_v56 = vld [vmem:[%s5730_s11 + $0xe8] ss:$16 sps:$4 sm:$0xff]   ;;  %2622 = vmatprep.subr.bf16.mxu0 %v4220_v7  ;;  %v4268_v17 = vld [vmem:[%s5730_s11 + $0x1c4] ss:$16 sps:$4 sm:$0xff]   ;;  %v4271_v18 = vld [vmem:[%s5730_s11 + $0x1cc] ss:$16 sps:$4 sm:$0xff]  }
 0x5a6   : > { %v4289_v7 = vld [vmem:[%s5730_s11 + $0x16c] ss:$16 sps:$4 sm:$0xff]  }
 0x5a7   : > { %2148 = vadd.xlane.f32.xlu0 %v2147_v34  ;;  %v5166_v12 = vadd.f32 %v2142_v21, %v4994_v58  ;;  %v4217_v58 = vld [vmem:[%s5730_s11 + $0xec] ss:$16 sps:$4 sm:$0xff]   ;;  %v4274_v21 = vld [vmem:[%s5730_s11 + $0x1a4] ss:$16 sps:$4 sm:$0xff]  }
 0x5a8   : > { %2663 = vmatprep.subr.bf16.mxu1 %v4217_v58  ;;  %2623 = vmatpush1.bf16.msra.mxu0 %v4218_v25  ;;  %v4277_v34 = vld [vmem:[%s5730_s11 + $0x1ac] ss:$16 sps:$4 sm:$0xff]   ;;  %v4286_v58 = vld [vmem:[%s5730_s11 + $0x164] ss:$16 sps:$4 sm:$0xff]   ;;  %v4287_v25 = vld [vmem:[%s5730_s11 + $0x168] ss:$16 sps:$4 sm:$0xff]  }
 0x5a9   : > { %v2150_v23 = vadd.f32 %v5166_v12, %v5163_v22  ;;  %2664 = vmatpush1.bf16.msra.mxu1 %v4215_v56  ;;  %2624 = vmatprep.subr.bf16.mxu0 %v4226_v27  ;;  %v4283_v56 = vld [vmem:[%s5730_s11 + $0x18c] ss:$16 sps:$4 sm:$0xff]  }
 0x5aa   : > { %2665 = vmatprep.subr.bf16.mxu1 %v4223_v24  ;;  %v4284_v24 = vld [vmem:[%s5730_s11 + $0x160] ss:$16 sps:$4 sm:$0xff]   ;;  %v4295_v27 = vld [vmem:[%s5730_s11 + $0x14c] ss:$16 sps:$4 sm:$0xff]  }
 0x5ab   : > { %2151 = vadd.xlane.f32.xlu1 %v2150_v23  ;;  %v4280_v23 = vld [vmem:[%s5730_s11 + $0x184] ss:$16 sps:$4 sm:$0xff]  }
 0x5ac   : > { %2625 = vmatpush1.bf16.msra.mxu0 %v4224_v30  ;;  %v4293_v30 = vld [vmem:[%s5730_s11 + $0x148] ss:$16 sps:$4 sm:$0xff]  }
 0x5ad   : > { %2666 = vmatpush1.bf16.msra.mxu1 %v4221_v26  ;;  %2626 = vmatprep.subr.bf16.mxu0 %v4232_v37  ;;  %v4292_v26 = vld [vmem:[%s5730_s11 + $0x144] ss:$16 sps:$4 sm:$0xff]   ;;  %v4301_v37 = vld [vmem:[%s5730_s11 + $0x12c] ss:$16 sps:$4 sm:$0xff]  }
 0x5ae   : > { %2667 = vmatprep.subr.bf16.mxu1 %v4229_v32  ;;  %v4290_v32 = vld [vmem:[%s5730_s11 + $0x140] ss:$16 sps:$4 sm:$0xff]  }
 0x5b0   : > { %2627 = vmatpush1.bf16.msra.mxu0 %v4230_v39  ;;  %v4299_v39 = vld [vmem:[%s5730_s11 + $0x128] ss:$16 sps:$4 sm:$0xff]  }
 0x5b1   : > { %2668 = vmatpush1.bf16.msra.mxu1 %v4227_v36  ;;  %2628 = vmatprep.subr.bf16.mxu0 %v4238_v41  ;;  %v4298_v36 = vld [vmem:[%s5730_s11 + $0x124] ss:$16 sps:$4 sm:$0xff]   ;;  %v4307_v41 = vld [vmem:[%s5730_s11 + $0x10c] ss:$16 sps:$4 sm:$0xff]  }
 0x5b2   : > { %2669 = vmatprep.subr.bf16.mxu1 %v4235_v38  ;;  %v4296_v38 = vld [vmem:[%s5730_s11 + $0x120] ss:$16 sps:$4 sm:$0xff]  }
 0x5b4   : > { %2629 = vmatpush1.bf16.msra.mxu0 %v4236_v43  ;;  %v4305_v43 = vld [vmem:[%s5730_s11 + $0x108] ss:$16 sps:$4 sm:$0xff]  }
 0x5b5   : > { %2670 = vmatpush1.bf16.msra.mxu1 %v4233_v40  ;;  %2630 = vmatprep.subr.bf16.mxu0 %v4244_v45  ;;  %v4304_v40 = vld [vmem:[%s5730_s11 + $0x104] ss:$16 sps:$4 sm:$0xff]  }
 0x5b6   : > { %2671 = vmatprep.subr.bf16.mxu1 %v4241_v42  ;;  %v4302_v42 = vld [vmem:[%s5730_s11 + $0x100] ss:$16 sps:$4 sm:$0xff]   ;;  %v4313_v45 = vld [vmem:[%s5732_s13 + $0x174] ss:$8 sps:$4 sm:$0xff]  }
 0x5b8   : > { %2631 = vmatpush1.bf16.msra.mxu0 %v4242_v47 }
 0x5b9   : > { %2672 = vmatpush1.bf16.msra.mxu1 %v4239_v44  ;;  %2632 = vmatprep.subr.bf16.mxu0 %v4250_v49  ;;  %v4310_v44 = vld [vmem:[%s5732_s13 + $0x74] ss:$8 sps:$4 sm:$0xff]  }
 0x5ba   : > { %2673 = vmatprep.subr.bf16.mxu1 %v4247_v46 }
 0x5bc   : > { %2633 = vmatpush1.bf16.msra.mxu0 %v4248_v51 }
 0x5bd   : > { %2674 = vmatpush1.bf16.msra.mxu1 %v4245_v48  ;;  %2634 = vmatprep.subr.bf16.mxu0 %v4256_v53 }
 0x5be   : > { %2675 = vmatprep.subr.bf16.mxu1 %v4253_v50 }
 0x5c0   : > { %2635 = vmatpush1.bf16.msra.mxu0 %v4254_v55 }
 0x5c1   : > { %2676 = vmatpush1.bf16.msra.mxu1 %v4251_v52  ;;  %2636 = vmatprep.subr.bf16.mxu0 %v4262_v61  ;;  %v2180_v52 = vld [vmem:[%s5728_s9] sm:$0x3] }
 0x5c2   : > { %2677 = vmatprep.subr.bf16.mxu1 %v4259_v54  ;;  %v2185_v55 = vrot.slane %v2180_v52, %v4970_v29  ;;  %v2196_v61 = vld [vmem:[%s5729_s10] sm:$0x3] }
 0x5c4   : > { %2637 = vmatpush2.bf16.msra.mxu0 %v4260_v63 }
 0x5c5   : > { %2678 = vmatpush1.bf16.msra.mxu1 %v4257_v60  ;;  %2638 = vmatprep.subr.bf16.mxu0 %v4268_v17  ;;  %v2189_v60 = vrot.slane %v2180_v52, %v4976_v31  ;;  %v4311_v17 = vld [vmem:[%s5732_s13 + $0x170] ss:$8 sps:$4 sm:$0xff]   ;;  %v4365_v52 = vld [vmem:[%s5732_s13 + $0x1e0] ss:$8 sps:$4 sm:$0xff]  }
 0x5c6   : > { %2679 = vmatprep.subr.bf16.mxu1 %v4265_v62 }
 0x5c9   : > { %2680 = vmatpush2.bf16.msra.mxu1 %v4263_v0  ;;  %v2201_v0 = vrot.slane %v2196_v61, %v4970_v29 }
 0x5ca   : > { %2681 = vmatprep.subr.bf16.mxu1 %v4271_v18  ;;  %v4316_v18 = vld [vmem:[%s5732_s13 + $0x64] ss:$8 sps:$4 sm:$0xff]  }
 0x630   : > { %v2149_v1 = vpop.xlane.xlu0 %2148 }
 0x631   : > { %v2154_v2 = vmul.f32 0.00390625, %v2149_v1  ;;  %v2205_v1 = vrot.slane %v2196_v61, %v4976_v31  ;;  %v4376_v61 = vld [vmem:[%s5732_s13 + $0xc4] ss:$8 sps:$4 sm:$0xff]  }
 0x633   : > { %v5279_v3 = vsub.f32 %v5155_v19, %v2154_v2  ;;  %v5282_v4 = vsub.f32 %v5158_v20, %v2154_v2  ;;  %v4266_v19 = vld [vmem:[%s5730_s11 + $0x1c0] ss:$16 sps:$4 sm:$0xff]   ;;  %v4269_v20 = vld [vmem:[%s5730_s11 + $0x1c8] ss:$16 sps:$4 sm:$0xff]  }
 0x634   : > { %v2152_v5 = vpop.xlane.xlu1 %2151  ;;  %2639 = vmatpush2.bf16.msra.mxu0 %v4266_v19  ;;  %2682 = vmatpush2.bf16.msra.mxu1 %v4269_v20  ;;  %v4319_v19 = vld [vmem:[%s5732_s13 + $0x164] ss:$8 sps:$4 sm:$0xff]   ;;  %v4314_v20 = vld [vmem:[%s5732_s13 + $0x60] ss:$8 sps:$4 sm:$0xff]  }
 0x635   : > { %v2155_v6 = vmul.f32 0.00390625, %v2152_v5  ;;  %v2160_v8 = vmul.f32 %v5279_v3, %v5279_v3  ;;  %v2161_v9 = vmul.f32 %v5282_v4, %v5282_v4  ;;  %2640 = vmatprep.subr.bf16.mxu0 %v4274_v21  ;;  %2683 = vmatprep.subr.bf16.mxu1 %v4277_v34  ;;  %v4317_v21 = vld [vmem:[%s5732_s13 + $0x160] ss:$8 sps:$4 sm:$0xff]   ;;  %v4322_v34 = vld [vmem:[%s5732_s13 + $0x54] ss:$8 sps:$4 sm:$0xff]  }
 0x637   : > { %v5289_v10 = vsub.f32 %v5163_v22, %v2155_v6  ;;  %v5292_v11 = vsub.f32 %v5166_v12, %v2155_v6  ;;  %v2164_v13 = vadd.f32 %v2161_v9, %v2160_v8  ;;  %v4272_v22 = vld [vmem:[%s5730_s11 + $0x1a0] ss:$16 sps:$4 sm:$0xff]   ;;  %v4275_v12 = vld [vmem:[%s5730_s11 + $0x1a8] ss:$16 sps:$4 sm:$0xff]  }
 0x638   : > { %2641 = vmatpush2.bf16.msra.mxu0 %v4272_v22  ;;  %2684 = vmatpush2.bf16.msra.mxu1 %v4275_v12  ;;  %v4325_v22 = vld [vmem:[%s5732_s13 + $0x154] ss:$8 sps:$4 sm:$0xff]   ;;  %v4320_v12 = vld [vmem:[%s5732_s13 + $0x50] ss:$8 sps:$4 sm:$0xff]  }
 0x639   : > { %2165 = vadd.xlane.f32.xlu0 %v2164_v13  ;;  %v2162_v14 = vmul.f32 %v5289_v10, %v5289_v10  ;;  %v2163_v15 = vmul.f32 %v5292_v11, %v5292_v11  ;;  %2642 = vmatprep.subr.bf16.mxu0 %v4280_v23  ;;  %v4323_v23 = vld [vmem:[%s5732_s13 + $0x150] ss:$8 sps:$4 sm:$0xff]  }
 0x63a   : > { %2685 = vmatprep.subr.bf16.mxu1 %v4283_v56  ;;  %v4326_v56 = vld [vmem:[%s5732_s13 + $0x40] ss:$8 sps:$4 sm:$0xff]  }
 0x63b   : > { %v2167_v16 = vadd.f32 %v2163_v15, %v2162_v14 }
 0x63c   : > { %2643 = vmatpush2.bf16.msra.mxu0 %v4278_v57  ;;  %2686 = vmatpush2.bf16.msra.mxu1 %v4281_v59  ;;  %v4328_v57 = vld [vmem:[%s5732_s13 + $0x44] ss:$8 sps:$4 sm:$0xff]  }
 0x63d   : > { %2168 = vadd.xlane.f32.xlu1 %v2167_v16  ;;  %2644 = vmatprep.subr.bf16.mxu0 %v4286_v58  ;;  %v4331_v59 = vld [vmem:[%s5732_s13 + $0x144] ss:$8 sps:$4 sm:$0xff]   ;;  %v4329_v58 = vld [vmem:[%s5732_s13 + $0x140] ss:$8 sps:$4 sm:$0xff]  }
 0x63e   : > { %2687 = vmatprep.subr.bf16.mxu1 %v4289_v7  ;;  %v4334_v7 = vld [vmem:[%s5732_s13 + $0x34] ss:$8 sps:$4 sm:$0xff]  }
 0x640   : > { %2645 = vmatpush2.bf16.msra.mxu0 %v4284_v24  ;;  %2688 = vmatpush2.bf16.msra.mxu1 %v4287_v25  ;;  %v4337_v24 = vld [vmem:[%s5732_s13 + $0x134] ss:$8 sps:$4 sm:$0xff]   ;;  %v4332_v25 = vld [vmem:[%s5732_s13 + $0x30] ss:$8 sps:$4 sm:$0xff]  }
 0x641   : > { %2646 = vmatprep.subr.bf16.mxu0 %v4292_v26  ;;  %2689 = vmatprep.subr.bf16.mxu1 %v4295_v27  ;;  %v4335_v26 = vld [vmem:[%s5732_s13 + $0x130] ss:$8 sps:$4 sm:$0xff]   ;;  %v4340_v27 = vld [vmem:[%s5732_s13 + $0x24] ss:$8 sps:$4 sm:$0xff]  }
 0x644   : > { %2647 = vmatpush2.bf16.msra.mxu0 %v4290_v32  ;;  %2690 = vmatpush2.bf16.msra.mxu1 %v4293_v30  ;;  %v4343_v32 = vld [vmem:[%s5732_s13 + $0x124] ss:$8 sps:$4 sm:$0xff]   ;;  %v4338_v30 = vld [vmem:[%s5732_s13 + $0x20] ss:$8 sps:$4 sm:$0xff]  }
 0x645   : > { %2648 = vmatprep.subr.bf16.mxu0 %v4298_v36  ;;  %2691 = vmatprep.subr.bf16.mxu1 %v4301_v37  ;;  %v4341_v36 = vld [vmem:[%s5732_s13 + $0x120] ss:$8 sps:$4 sm:$0xff]   ;;  %v4346_v37 = vld [vmem:[%s5732_s13 + $0x14] ss:$8 sps:$4 sm:$0xff]  }
 0x648   : > { %2649 = vmatpush2.bf16.msra.mxu0 %v4296_v38  ;;  %2692 = vmatpush2.bf16.msra.mxu1 %v4299_v39  ;;  %v4349_v38 = vld [vmem:[%s5732_s13 + $0x114] ss:$8 sps:$4 sm:$0xff]   ;;  %v4344_v39 = vld [vmem:[%s5732_s13 + $0x10] ss:$8 sps:$4 sm:$0xff]  }
 0x649   : > { %2650 = vmatprep.subr.bf16.mxu0 %v4304_v40  ;;  %2693 = vmatprep.subr.bf16.mxu1 %v4307_v41  ;;  %v4347_v40 = vld [vmem:[%s5732_s13 + $0x110] ss:$8 sps:$4 sm:$0xff]   ;;  %v4352_v41 = vld [vmem:[%s5732_s13 + $0x4] ss:$8 sps:$4 sm:$0xff]  }
 0x64c   : > { %2651 = vmatpush2.bf16.msra.mxu0 %v4302_v42  ;;  %2694 = vmatpush2.bf16.msra.mxu1 %v4305_v43  ;;  %v4355_v42 = vld [vmem:[%s5732_s13 + $0x104] ss:$8 sps:$4 sm:$0xff]   ;;  %v4350_v43 = vld [vmem:[%s5732_s13] ss:$8 sps:$4 sm:$0xff]  }
 0x64d   : > { %3114 = vmatprep.subr.bf16.mxu0 %v4310_v44  ;;  %3157 = vmatprep.subr.bf16.mxu1 %v4313_v45  ;;  %v4353_v44 = vld [vmem:[%s5732_s13 + $0x100] ss:$8 sps:$4 sm:$0xff]   ;;  %v4358_v45 = vld [vmem:[%s5732_s13 + $0xf4] ss:$8 sps:$4 sm:$0xff]  }
 0x6c2   : > { %v2166_v46 = vpop.xlane.xlu0 %2165 }
 0x6c3   : > { %v2170_v47 = vmul.f32 0.00390625, %v2166_v46  ;;  %v4361_v46 = vld [vmem:[%s5732_s13 + $0x1f4] ss:$8 sps:$4 sm:$0xff]  }
 0x6c5   : > { %v2172_v48 = vadd.f32 1e-05, %v2170_v47  ;;  %v4356_v47 = vld [vmem:[%s5732_s13 + $0xf0] ss:$8 sps:$4 sm:$0xff]  }
 0x6c6   : > { %v2169_v49 = vpop.xlane.xlu1 %2168 }
 0x6c7   : > { %4436 = vrsqrt.f32 %v2172_v48  ;;  %v2171_v50 = vmul.f32 0.00390625, %v2169_v49  ;;  %v4359_v48 = vld [vmem:[%s5732_s13 + $0x1f0] ss:$8 sps:$4 sm:$0xff]   ;;  %v4364_v49 = vld [vmem:[%s5732_s13 + $0xe4] ss:$8 sps:$4 sm:$0xff]  }
 0x6c9   : > { %v2173_v51 = vadd.f32 1e-05, %v2171_v50  ;;  %v4367_v50 = vld [vmem:[%s5732_s13 + $0x1e4] ss:$8 sps:$4 sm:$0xff]  }
 0x6cb   : > { %4438 = vrsqrt.f32 %v2173_v51  ;;  %v4362_v51 = vld [vmem:[%s5732_s13 + $0xe0] ss:$8 sps:$4 sm:$0xff]  }
 0x6d4   : > { %v4437_v53 = vpop.eup %4436 }
 0x6d5   : > { %v2177_v54 = vmul.f32 %v4437_v53, %v5282_v4  ;;  %v2176_v62 = vmul.f32 %v4437_v53, %v5279_v3  ;;  %v4370_v53 = vld [vmem:[%s5732_s13 + $0xd4] ss:$8 sps:$4 sm:$0xff]  }
 0x6d7   : > { %v2193_v5 = vmul.f32 %v2189_v60, %v2177_v54  ;;  %v2192_v6 = vmul.f32 %v2185_v55, %v2176_v62  ;;  %v4373_v54 = vld [vmem:[%s5732_s13 + $0x1d4] ss:$8 sps:$4 sm:$0xff]   ;;  %v4379_v62 = vld [vmem:[%s5732_s13 + $0x1c4] ss:$8 sps:$4 sm:$0xff]  }
 0x6d8   : > { %v4439_v63 = vpop.eup %4438 }
 0x6d9   : > { %v2179_v2 = vmul.f32 %v4439_v63, %v5292_v11  ;;  %v2178_v4 = vmul.f32 %v4439_v63, %v5289_v10  ;;  %v5402_v13 = vadd.f32 %v2205_v1, %v2193_v5  ;;  %v5406_v15 = vadd.f32 %v2201_v0, %v2192_v6  ;;  %v4308_v10 = vld [vmem:[%s5732_s13 + $0x70] ss:$8 sps:$4 sm:$0xff]   ;;  %v4374_v63 = vld [vmem:[%s5732_s13 + $0xc0] ss:$8 sps:$4 sm:$0xff]   ;;  %v4388_v6 = vld [vmem:[%s5732_s13 + $0xa4] ss:$8 sps:$4 sm:$0xff]  }
 0x6da   : > { %v4380_v5 = vld [vmem:[%s5732_s13 + $0xb0] ss:$8 sps:$4 sm:$0xff]  }
 0x6db   : > { %v2195_v8 = vmul.f32 %v2189_v60, %v2179_v2  ;;  %v2194_v9 = vmul.f32 %v2185_v55, %v2178_v4  ;;  %v4368_v55 = vld [vmem:[%s5732_s13 + $0xd0] ss:$8 sps:$4 sm:$0xff]   ;;  %v4385_v2 = vld [vmem:[%s5732_s13 + $0x1b4] ss:$8 sps:$4 sm:$0xff]  }
 0x6dc   : > { %v4371_v60 = vld [vmem:[%s5732_s13 + $0x1d0] ss:$8 sps:$4 sm:$0xff]  }
 0x6dd   : > { %v5404_v14 = vadd.f32 %v2205_v1, %v2195_v8  ;;  %v5408_v3 = vadd.f32 %v2201_v0, %v2194_v9  ;;  %v4377_v0 = vld [vmem:[%s5732_s13 + $0x1c0] ss:$8 sps:$4 sm:$0xff]   ;;  %v4382_v1 = vld [vmem:[%s5732_s13 + $0xb4] ss:$8 sps:$4 sm:$0xff]   ;;  %v4383_v4 = vld [vmem:[%s5732_s13 + $0x1b0] ss:$8 sps:$4 sm:$0xff]  }
 0x6de   : > { %v4391_v8 = vld [vmem:[%s5732_s13 + $0x1a4] ss:$8 sps:$4 sm:$0xff]   ;;  %v4386_v9 = vld [vmem:[%s5732_s13 + $0xa0] ss:$8 sps:$4 sm:$0xff]  }
 0x6df   : > { %v2213_v16 = vpack.c.bf16 %v5404_v14, %v5402_v13  ;;  %v2212_v11 = vpack.c.bf16 %v5408_v3, %v5406_v15 }
 0x6e1   : > { %2652 = vmatprep.mubr.bf16.mxu0 %v2213_v16  ;;  %2695 = vmatprep.mubr.bf16.mxu1 %v2213_v16  ;;  %v4389_v16 = vld [vmem:[%s5732_s13 + $0x1a0] ss:$8 sps:$4 sm:$0xff]  }
 0x6e2   : > { %2653 = vmatmul.mubr.bf16.vlgmr.msra.gmra.mxu0 %v2212_v11  ;;  %2696 = vmatmul.mubr.bf16.vlgmr.msra.gmra.mxu1 %v2212_v11  ;;  %v4394_v11 = vld [vmem:[%s5732_s13 + $0x94] ss:$8 sps:$4 sm:$0xff]  }
 0x6e3   : > { %3115 = vmatpush1.bf16.msra.mxu0 %v4308_v10  ;;  %3158 = vmatpush1.bf16.msra.mxu1 %v4311_v17  ;;  %v4397_v10 = vld [vmem:[%s5732_s13 + $0x194] ss:$8 sps:$4 sm:$0xff]   ;;  %v4392_v17 = vld [vmem:[%s5732_s13 + $0x90] ss:$8 sps:$4 sm:$0xff]  }
 0x6e4   : > { %3116 = vmatprep.subr.bf16.mxu0 %v4316_v18  ;;  %3159 = vmatprep.subr.bf16.mxu1 %v4319_v19  ;;  %v4395_v18 = vld [vmem:[%s5732_s13 + $0x190] ss:$8 sps:$4 sm:$0xff]   ;;  %v4400_v19 = vld [vmem:[%s5732_s13 + $0x84] ss:$8 sps:$4 sm:$0xff]  }
 0x6e7   : > { %3117 = vmatpush1.bf16.msra.mxu0 %v4314_v20  ;;  %3160 = vmatpush1.bf16.msra.mxu1 %v4317_v21  ;;  %v4403_v20 = vld [vmem:[%s5732_s13 + $0x184] ss:$8 sps:$4 sm:$0xff]   ;;  %v4398_v21 = vld [vmem:[%s5732_s13 + $0x80] ss:$8 sps:$4 sm:$0xff]  }
 0x6e8   : > { %3118 = vmatprep.subr.bf16.mxu0 %v4322_v34  ;;  %3161 = vmatprep.subr.bf16.mxu1 %v4325_v22  ;;  %v4401_v34 = vld [vmem:[%s5732_s13 + $0x180] ss:$8 sps:$4 sm:$0xff]  }
 0x6e9   : > { %v2278_v22 = vld [vmem:[%s5731_s12] sm:$0xf] }
 0x6eb   : > { %3119 = vmatpush1.bf16.msra.mxu0 %v4320_v12  ;;  %3162 = vmatpush1.bf16.msra.mxu1 %v4323_v23 }
 0x6ec   : > { %3120 = vmatprep.subr.bf16.mxu0 %v4328_v57  ;;  %3163 = vmatprep.subr.bf16.mxu1 %v4331_v59  ;;  %v2287_v57 = vrot.slane %v2278_v22, %v4976_v31  ;;  %v2295_v59 = vrot.slane %v2278_v22, %v995_v35 }
 0x6ef   : > { %3121 = vmatpush1.bf16.msra.mxu0 %v4326_v56  ;;  %3164 = vmatpush1.bf16.msra.mxu1 %v4329_v58  ;;  %v2283_v56 = vrot.slane %v2278_v22, %v4970_v29  ;;  %v2291_v58 = vrot.slane %v2278_v22, %v991_v33 }
 0x6f0   : > { %3122 = vmatprep.subr.bf16.mxu0 %v4334_v7  ;;  %3165 = vmatprep.subr.bf16.mxu1 %v4337_v24 }
 0x6f3   : > { %3123 = vmatpush1.bf16.msra.mxu0 %v4332_v25  ;;  %3166 = vmatpush1.bf16.msra.mxu1 %v4335_v26 }
 0x6f4   : > { %3124 = vmatprep.subr.bf16.mxu0 %v4340_v27  ;;  %3167 = vmatprep.subr.bf16.mxu1 %v4343_v32 }
 0x6f7   : > { %3125 = vmatpush1.bf16.msra.mxu0 %v4338_v30  ;;  %3168 = vmatpush1.bf16.msra.mxu1 %v4341_v36 }
 0x6f8   : > { %3126 = vmatprep.subr.bf16.mxu0 %v4346_v37  ;;  %3169 = vmatprep.subr.bf16.mxu1 %v4349_v38 }
 0x6fb   : > { %3127 = vmatpush1.bf16.msra.mxu0 %v4344_v39  ;;  %3170 = vmatpush1.bf16.msra.mxu1 %v4347_v40 }
 0x6fc   : > { %3128 = vmatprep.subr.bf16.mxu0 %v4352_v41  ;;  %3171 = vmatprep.subr.bf16.mxu1 %v4355_v42 }
 0x6ff   : > { %3129 = vmatpush1.bf16.msra.mxu0 %v4350_v43  ;;  %3172 = vmatpush1.bf16.msra.mxu1 %v4353_v44 }
 0x700   : > { %3130 = vmatprep.subr.bf16.mxu0 %v4358_v45  ;;  %3173 = vmatprep.subr.bf16.mxu1 %v4361_v46 }
 0x703   : > { %3131 = vmatpush2.bf16.msra.mxu0 %v4356_v47  ;;  %3174 = vmatpush2.bf16.msra.mxu1 %v4359_v48 }
 0x704   : > { %3132 = vmatprep.subr.bf16.mxu0 %v4364_v49  ;;  %3175 = vmatprep.subr.bf16.mxu1 %v4367_v50 }
 0x707   : > { %3133 = vmatpush2.bf16.msra.mxu0 %v4362_v51  ;;  %3176 = vmatpush2.bf16.msra.mxu1 %v4365_v52  ;;  %v2782_v52 = vld [vmem:[%s5733_s14] sm:$0x3] }
 0x708   : > { %3134 = vmatprep.subr.bf16.mxu0 %v4370_v53  ;;  %3177 = vmatprep.subr.bf16.mxu1 %v4373_v54  ;;  %v2787_v53 = vrot.slane %v2782_v52, %v4970_v29  ;;  %v2791_v54 = vrot.slane %v2782_v52, %v4976_v31 }
 0x70b   : > { %3135 = vmatpush2.bf16.msra.mxu0 %v4368_v55  ;;  %3178 = vmatpush2.bf16.msra.mxu1 %v4371_v60 }
 0x70c   : > { %3136 = vmatprep.subr.bf16.mxu0 %v4376_v61  ;;  %3179 = vmatprep.subr.bf16.mxu1 %v4379_v62 }
 0x70f   : > { %3137 = vmatpush2.bf16.msra.mxu0 %v4374_v63  ;;  %3180 = vmatpush2.bf16.msra.mxu1 %v4377_v0 }
 0x710   : > { %3138 = vmatprep.subr.bf16.mxu0 %v4382_v1  ;;  %3181 = vmatprep.subr.bf16.mxu1 %v4385_v2 }
 0x713   : > { %3139 = vmatpush2.bf16.msra.mxu0 %v4380_v5  ;;  %3182 = vmatpush2.bf16.msra.mxu1 %v4383_v4 }
 0x714   : > { %3140 = vmatprep.subr.bf16.mxu0 %v4388_v6  ;;  %3183 = vmatprep.subr.bf16.mxu1 %v4391_v8 }
 0x717   : > { %3141 = vmatpush2.bf16.msra.mxu0 %v4386_v9  ;;  %3184 = vmatpush2.bf16.msra.mxu1 %v4389_v16 }
 0x718   : > { %3142 = vmatprep.subr.bf16.mxu0 %v4394_v11  ;;  %3185 = vmatprep.subr.bf16.mxu1 %v4397_v10 }
 0x71b   : > { %3143 = vmatpush2.bf16.msra.mxu0 %v4392_v17  ;;  %3186 = vmatpush2.bf16.msra.mxu1 %v4395_v18 }
 0x71c   : > { %3144 = vmatprep.subr.bf16.mxu0 %v4400_v19  ;;  %3187 = vmatprep.subr.bf16.mxu1 %v4403_v20 }
 0x71f   : > { %3145 = vmatpush2.bf16.msra.mxu0 %v4398_v21  ;;  %3188 = vmatpush2.bf16.msra.mxu1 %v4401_v34 }
 0x7a2   : > { %v2654_v12 = vpop.f32.mrf.mxu0  ;;  %v2697_v23 = vpop.f32.mrf.mxu1 }
 0x7a3   : > { %v2655_v37 = vadd.f32 %v2654_v12, %v2283_v56  ;;  %v2698_v38 = vadd.f32 %v2697_v23, %v2291_v58 }
 0x7a4   : > { %v2656_v7 = vpop.f32.mrf.mxu0  ;;  %v2699_v24 = vpop.f32.mrf.mxu1 }
 0x7a5   : > { %v2657_v27 = vadd.f32 %v2656_v7, %v2287_v57  ;;  %v2700_v32 = vadd.f32 %v2699_v24, %v2295_v59  ;;  %v2706_v46 = vmax.f32 %v2655_v37, 0.0  ;;  %v2708_v47 = vmax.f32 %v2698_v38, 0.0  ;;  %v4409_v37 = vld [vmem:[%s5736_s17 + $0x28] sm:$0xff]   ;;  %v4410_v38 = vld [vmem:[%s5736_s17 + $0x60] sm:$0xff]  }
 0x7a6   : > { %v2658_v25 = vpop.f32.mrf.mxu0  ;;  %v2701_v26 = vpop.f32.mrf.mxu1 }
 0x7a7   : > { %v2659_v30 = vadd.f32 %v2658_v25, %v2283_v56  ;;  %v2702_v36 = vadd.f32 %v2701_v26, %v2291_v58  ;;  %v2707_v44 = vmax.f32 %v2657_v27, 0.0  ;;  %v2709_v45 = vmax.f32 %v2700_v32, 0.0  ;;  %v4405_v27 = vld [vmem:[%s5736_s17 + $0x38] sm:$0xff]   ;;  %v4406_v32 = vld [vmem:[%s5736_s17 + $0x70] sm:$0xff]  }
 0x7a8   : > { %v2660_v39 = vpop.f32.mrf.mxu0  ;;  %v2703_v40 = vpop.f32.mrf.mxu1 }
 0x7a9   : > { %v2661_v41 = vadd.f32 %v2660_v39, %v2287_v57  ;;  %v2704_v42 = vadd.f32 %v2703_v40, %v2295_v59  ;;  %v2710_v35 = vmax.f32 %v2659_v30, 0.0  ;;  %v2712_v43 = vmax.f32 %v2702_v36, 0.0  ;;  %v4407_v30 = vld [vmem:[%s5736_s17 + $0x30] sm:$0xff]   ;;  %v4408_v36 = vld [vmem:[%s5736_s17 + $0x68] sm:$0xff]   ;;  %v4411_v39 = vld [vmem:[%s5736_s17 + $0x20] sm:$0xff]  }
 0x7aa   : > { %v4412_v40 = vld [vmem:[%s5736_s17 + $0x58] sm:$0xff]  }
 0x7ab   : > { %v2711_v28 = vmax.f32 %v2661_v41, 0.0  ;;  %v2713_v33 = vmax.f32 %v2704_v42, 0.0  ;;  %v2714_v50 = vpack.c.bf16 %v2710_v35, %v2706_v46  ;;  %v2716_v51 = vpack.c.bf16 %v2712_v43, %v2708_v47  ;;  %v4413_v41 = vld [vmem:[%s5736_s17 + $0x18] sm:$0xff]   ;;  %v4414_v42 = vld [vmem:[%s5736_s17 + $0x50] sm:$0xff]   ;;  %v4416_v43 = vld [vmem:[%s5736_s17 + $0x48] sm:$0xff]  }
 0x7ac   : > { %v4415_v35 = vld [vmem:[%s5736_s17 + $0x10] sm:$0xff]  }
 0x7ad   : > { %v2715_v48 = vpack.c.bf16 %v2711_v28, %v2707_v44  ;;  %v2717_v49 = vpack.c.bf16 %v2713_v33, %v2709_v45  ;;  %v4417_v44 = vld [vmem:[%s5736_s17 + $0x8] sm:$0xff]   ;;  %v4418_v45 = vld [vmem:[%s5736_s17 + $0x40] sm:$0xff]  }
 0x7ae   : > { %v4419_v28 = vld [vmem:[%s5736_s17] sm:$0xff]  }
 0x7af   : > { %3146 = vmatprep.mubr.bf16.mxu0 %v2715_v48  ;;  %3189 = vmatprep.mubr.bf16.mxu1 %v2717_v49 }
 0x7b0   : > { %3147 = vmatmul.mubr.bf16.vlgmr.msra.gmra.mxu0 %v2714_v50  ;;  %3190 = vmatmul.mubr.bf16.vlgmr.msra.gmra.mxu1 %v2716_v51  ;;  %v3236_v51 = vld [vmem:[%s5734_s15] sm:$0x3] }
 0x870   : > { %v3148_v55 = vpop.f32.mrf.mxu0  ;;  %v3191_v60 = vpop.f32.mrf.mxu1 }
 0x871   : > { %v3149_v61 = vadd.f32 %v3148_v55, %v2787_v53 }
 0x872   : > { %v3150_v62 = vpop.f32.mrf.mxu0  ;;  %v3193_v63 = vpop.f32.mrf.mxu1 }
 0x873   : > { %v3192_v0 = vadd.f32 %v3191_v60, %v3149_v61  ;;  %v3151_v1 = vadd.f32 %v3150_v62, %v2791_v54  ;;  %v3245_v60 = vrot.slane %v3236_v51, %v4976_v31  ;;  %v3252_v61 = vld [vmem:[%s5735_s16] sm:$0x3] }
 0x874   : > { %v3152_v2 = vpop.f32.mrf.mxu0  ;;  %v3195_v5 = vpop.f32.mrf.mxu1 }
 0x875   : > { %v3194_v4 = vadd.f32 %v3193_v63, %v3151_v1  ;;  %v3153_v6 = vadd.f32 %v3152_v2, %v2787_v53  ;;  %v3200_v9 = vadd.f32 %v3192_v0, %v5406_v15  ;;  %v3241_v53 = vrot.slane %v3236_v51, %v4970_v29 }
 0x876   : > { %v3154_v8 = vpop.f32.mrf.mxu0  ;;  %v3197_v17 = vpop.f32.mrf.mxu1  ;;  %v3257_v63 = vrot.slane %v3252_v61, %v4970_v29  ;;  %v3261_v0 = vrot.slane %v3252_v61, %v4976_v31 }
 0x877   : > { %v3201_v16 = vadd.f32 %v3194_v4, %v5402_v13  ;;  %v3196_v11 = vadd.f32 %v3195_v5, %v3153_v6  ;;  %v3155_v10 = vadd.f32 %v3154_v8, %v2791_v54 }
 0x879   : > { %v3198_v18 = vadd.f32 %v3197_v17, %v3155_v10  ;;  %v3204_v19 = vadd.f32 %v3201_v16, %v3200_v9  ;;  %v3202_v20 = vadd.f32 %v3196_v11, %v5408_v3 }
 0x87b   : > { %v3203_v21 = vadd.f32 %v3198_v18, %v5404_v14  ;;  %3205 = vadd.xlane.f32.xlu0 %v3204_v19  ;;  %v4404_v14 = vld [vmem:[%s5736_s17 + $0x78] sm:$0xff]  }
 0x87c   : > { %3870 = vmatprep.subr.bf16.mxu0 %v4404_v14 }
 0x87d   : > { %v3207_v34 = vadd.f32 %v3203_v21, %v3202_v20  ;;  %3871 = vmatpush3.bf16.msra.mxu0 %v4405_v27 }
 0x87e   : > { %3872 = vmatprep.subr.bf16.mxu0 %v4406_v32 }
 0x87f   : > { %3208 = vadd.xlane.f32.xlu1 %v3207_v34 }
 0x881   : > { %3873 = vmatpush3.bf16.msra.mxu0 %v4407_v30 }
 0x882   : > { %3874 = vmatprep.subr.bf16.mxu0 %v4408_v36 }
 0x885   : > { %3875 = vmatpush3.bf16.msra.mxu0 %v4409_v37 }
 0x886   : > { %3876 = vmatprep.subr.bf16.mxu0 %v4410_v38 }
 0x889   : > { %3877 = vmatpush3.bf16.msra.mxu0 %v4411_v39 }
 0x88a   : > { %3878 = vmatprep.subr.bf16.mxu0 %v4412_v40 }
 0x88d   : > { %3879 = vmatpush3.bf16.msra.mxu0 %v4413_v41 }
 0x88e   : > { %3880 = vmatprep.subr.bf16.mxu0 %v4414_v42 }
 0x891   : > { %3881 = vmatpush3.bf16.msra.mxu0 %v4415_v35 }
 0x892   : > { %3882 = vmatprep.subr.bf16.mxu0 %v4416_v43 }
 0x895   : > { %3883 = vmatpush3.bf16.msra.mxu0 %v4417_v44 }
 0x896   : > { %3884 = vmatprep.subr.bf16.mxu0 %v4418_v45 }
 0x899   : > { %3885 = vmatpush3.bf16.msra.mxu0 %v4419_v28 }
 0x904   : > { %v3206_v22 = vpop.xlane.xlu0 %3205 }
 0x905   : > { %v3210_v12 = vmul.f32 0.00390625, %v3206_v22 }
 0x907   : > { %v3212_v23 = vsub.f32 %v3200_v9, %v3210_v12  ;;  %v3213_v57 = vsub.f32 %v3201_v16, %v3210_v12 }
 0x908   : > { %v3209_v59 = vpop.xlane.xlu1 %3208 }
 0x909   : > { %v3211_v15 = vmul.f32 0.00390625, %v3209_v59  ;;  %v3216_v56 = vmul.f32 %v3212_v23, %v3212_v23  ;;  %v3217_v13 = vmul.f32 %v3213_v57, %v3213_v57 }
 0x90b   : > { %v3214_v58 = vsub.f32 %v3202_v20, %v3211_v15  ;;  %v3215_v7 = vsub.f32 %v3203_v21, %v3211_v15  ;;  %v3220_v24 = vadd.f32 %v3217_v13, %v3216_v56 }
 0x90d   : > { %3221 = vadd.xlane.f32.xlu0 %v3220_v24  ;;  %v3218_v25 = vmul.f32 %v3214_v58, %v3214_v58  ;;  %v3219_v26 = vmul.f32 %v3215_v7, %v3215_v7 }
 0x90f   : > { %v3223_v3 = vadd.f32 %v3219_v26, %v3218_v25  ;;  %v3319_v25 = vld [vmem:[%s5737_s18] sm:$0x1] }
 0x911   : > { %3224 = vadd.xlane.f32.xlu1 %v3223_v3 }
 0x996   : > { %v3222_v33 = vpop.xlane.xlu0 %3221 }
 0x997   : > { %v3226_v46 = vmul.f32 0.00390625, %v3222_v33 }
 0x999   : > { %v3228_v47 = vadd.f32 1e-05, %v3226_v46 }
 0x99a   : > { %v3225_v48 = vpop.xlane.xlu1 %3224 }
 0x99b   : > { %4440 = vrsqrt.f32 %v3228_v47  ;;  %v3227_v49 = vmul.f32 0.00390625, %v3225_v48 }
 0x99d   : > { %v3229_v50 = vadd.f32 1e-05, %v3227_v49 }
 0x99f   : > { %4442 = vrsqrt.f32 %v3229_v50 }
 0x9a8   : > { %v4441_v52 = vpop.eup %4440 }
 0x9a9   : > { %v3232_v54 = vmul.f32 %v4441_v52, %v3212_v23  ;;  %v3233_v55 = vmul.f32 %v4441_v52, %v3213_v57 }
 0x9ab   : > { %v3248_v1 = vmul.f32 %v3241_v53, %v3232_v54  ;;  %v3249_v4 = vmul.f32 %v3245_v60, %v3233_v55 }
 0x9ac   : > { %v4443_v62 = vpop.eup %4442 }
 0x9ad   : > { %v3234_v2 = vmul.f32 %v4443_v62, %v3214_v58  ;;  %v3235_v5 = vmul.f32 %v4443_v62, %v3215_v7  ;;  %v3265_v9 = vadd.f32 %v3261_v0, %v3249_v4  ;;  %v3264_v11 = vadd.f32 %v3257_v63, %v3248_v1 }
 0x9af   : > { %v3250_v6 = vmul.f32 %v3241_v53, %v3234_v2  ;;  %v3251_v8 = vmul.f32 %v3245_v60, %v3235_v5 }
 0x9b1   : > { %v3267_v16 = vadd.f32 %v3261_v0, %v3251_v8  ;;  %v3266_v10 = vadd.f32 %v3257_v63, %v3250_v6 }
 0x9b3   : > { %v3275_v17 = vadd.f32 %v3267_v16, %v3265_v9  ;;  %v3268_v18 = vadd.f32 %v3266_v10, %v3264_v11 }
 0x9b5   : > { %v3276_v19 = vrot.slane %v3275_v17, 4  ;;  %v3269_v20 = vrot.slane %v3268_v18, 4 }
 0x9b7   : > { %v3277_v21 = vadd.f32 %v3276_v19, %v3275_v17  ;;  %v3270_v34 = vadd.f32 %v3269_v20, %v3268_v18 }
 0x9b9   : > { %v3278_v29 = vrot.slane %v3277_v21, 2  ;;  %v3271_v22 = vrot.slane %v3270_v34, 2 }
 0x9bb   : > { %v3279_v31 = vadd.f32 %v3278_v29, %v3277_v21  ;;  %v3272_v12 = vadd.f32 %v3271_v22, %v3270_v34 }
 0x9bd   : > { %v3280_v23 = vrot.slane %v3279_v31, 1  ;;  %v3273_v57 = vrot.slane %v3272_v12, 1 }
 0x9bf   : > { %v3281_v59 = vadd.f32 %v3280_v23, %v3279_v31  ;;  %v3274_v15 = vadd.f32 %v3273_v57, %v3272_v12 }
 0x9c1   : > { %v3284_v56 = vmul.f32 0.0625, %v3281_v59  ;;  %v3283_v13 = vmul.f32 0.0625, %v3274_v15 }
 0x9c3   : > { %v3286_v58 = vpack.c.bf16 %v3284_v56, %v3284_v56  ;;  %v3285_v7 = vpack.c.bf16 %v3283_v13, %v3283_v13 }
 0x9c5   : > { %3448 = vmatprep.mubr.bf16.mxu0 %v3286_v58 }
 0x9c6   : > { %3449 = vmatmul.mubr.bf16.vlgmr.msra.gmra.mxu0 %v3285_v7 }
 0xa86   : > { %v3886_v24 = vpop.f32.mrf.mxu0 }
 0xa88   : > { %v3887_v26 = vpop.f32.mrf.mxu0 }
 0xa89   : > { %v3888_v3 = vadd.f32 %v3887_v26, %v3886_v24 }
 0xa8a   : > { %v3889_v14 = vpop.f32.mrf.mxu0 }
 0xa8b   : > { %v3451_v27 = vadd.f32 %v3888_v3, %v3319_v25 }
 0xa8c   : > { %v3890_v32 = vpop.f32.mrf.mxu0 }
 0xa8d   : > { %3456 = vst [vmem:[%s624_s20] sm:$0x1] %v3451_v27 }
 0xa8e   : > { %4509 = shalt.err (!%p4506_p3)
}
 0xa8f   : > { %s4510_s25 = scalar_lea.hbm %s5684_s26, 16  ;;  %s4514_s20 = scalar_lea.hbm %s5738_s19, 32 }
 0xa90   : > { %p4511_p2 = scmp.ne.s32.totalorder %s5684_s26, %s4510_s25  ;;  %p4515_p7 = scmp.lt.s32.totalorder %s5684_s26, %s5738_s19 }
 0xa91   : > { %p4516_p6 = scmp.lt.s32.totalorder %s4514_s20, %s4510_s25 }
 0xa92   : > { %p4512_p4 = pnand %p4511_p2, %p4712_p5 }
 0xa93   : > { %p4517_p9 = por %p4516_p6, %p4515_p7 }
 0xa94   : > { %p4513_p13 = pneg %p4512_p4 }
 0xa96   : > { %p4518_p10 = pnand %p4517_p9, %p4513_p13 }
 0xa98   : > { %4521 = shalt.err (!%p4518_p10)
}
 0xa99   : > { %3924 = dma.vmem_to_hbm [thread:$0]  (%p4712_p5), %s3471_s21, 16, %s5684_s26, %s3458_s29  }
 0xa9a PF: > { %s5768_s22 = sld [smem:[#allocation13_spill]] }
 0xa9b   : > { %s5769_s1 = sld [smem:[#allocation11_spill]] }
 0xa9c   : > { %s5770_s24 = sld [smem:[#allocation16_spill]] }
 0xaa0   : > { %p3941_p12 = scmp.ge.s32.totalorder %s5768_s22, 2 }
 0xaa1   : > { %s3482_s23 = sand.u32 1, %s5769_s1  }
 0xaa2   : > { %p5771_p8 = scmp.ne.s32.totalorder %s5770_s24, 0  ;;  %s3483_s28 = scalar_lea.sflag [#allocation4], %s3482_s23 }
 0xaa4   : > { %p3934_p11 = pnand %p3941_p12, %p5771_p8 }
 0xaa6   : > { %p3935_p0 = pneg %p3934_p11 }
 0xaa8   : > { %4547 = dma.done.wait (%p3935_p0), %s3483_s28, 16  }
 0xaa9   : > { %4549 = vsyncadd (%p3935_p0), %s3483_s28, 4294967280  ;;  %s5772_s21 = sld [smem:[#allocation14_spill]]  ;;  %s5775_s0 = smov %s4556_s30 }
 0xaaa   : > { %s5773_s25 = sld [smem:[#allocation12_spill]] }
 0xaab   : > { %s5774_s20 = sld [smem:[#allocation15_spill]] }
 0xaaf   : > { %p31_p1 = scmp.ge.s32.totalorder %s5772_s21, 4  }
 0xab0   : > { %s5776_s30 = smov %s5773_s25 }
 0xab1   :  { %33 = sbr.rel (!%p31_p1) target bundleno = 10 (0xa), region = 140 }
 0xab6   :  { %3487 = vsyncpa [#allocation3], 1 }
 0xab7   :  { %3489 = vsyncpa [#allocation3 + $0x1], 1 }
 0xab8   :  { %3490 = vsyncpa [#allocation6], 1 }
 0xab9   :  { %3491 = vsyncpa [#allocation4], 1 }
 0xaba   :  { %3493 = vsyncpa [#allocation4 + $0x1], 1 }

</bundles_post_ra>
